<compile_context>
chip_gen: v7x
topology: tpu7x:2x2x1
jax: 0.10.0
libtpu: 0.0.40
codegen_flags: <defaults>
</compile_context>

<pallas_src>
import functools

import jax
import jax.numpy as jnp
from jax.experimental import pallas as pl
from jax.experimental.pallas import tpu as pltpu

IN = 21      # LSTM input_size
HID = 128    # LSTM hidden_size
OUT = 2      # Linear out_features


def lstm_kernel(gx_ref, whh_ref, h0_ref, c0_ref,
                hout_ref, cout_ref,
                h_sc, c_sc, *, chunk):
    """One grid step == CHUNK LSTM time steps. h/c carried in VMEM scratch.

    gx_ref  : (CHUNK, BB, 4*HID) f32 pre-activations (x @ W_ih^T + b), precomputed.
    whh_ref : (HID, 4*HID) bf16 recurrent weights (MXU operand only).
    """
    # Re-initialize the carry at the start of each batch block's time sweep.
    @pl.when(pl.program_id(1) == 0)
    def _init():
        h_sc[...] = h0_ref[...]
        c_sc[...] = c0_ref[...]

    whh = whh_ref[...]                              # loaded once per grid step

    def step(j, carry):
        h, c = carry
        # Only the recurrent (BB,128)x(128,512) matmul is on the sequential path.
        gates = gx_ref[j] + jnp.dot(h.astype(whh.dtype), whh,
                                    preferred_element_type=jnp.float32)
        i_g = jax.nn.sigmoid(gates[:, 0 * HID:1 * HID])
        f_g = jax.nn.sigmoid(gates[:, 1 * HID:2 * HID])
        g_g = jnp.tanh(gates[:, 2 * HID:3 * HID])
        o_g = jax.nn.sigmoid(gates[:, 3 * HID:4 * HID])
        c = f_g * c + i_g * g_g                     # elementwise stays f32
        h = o_g * jnp.tanh(c)
        return h, c

    h, c = jax.lax.fori_loop(0, chunk, step, (h_sc[...], c_sc[...]),
                             unroll=min(chunk, 8))

    h_sc[...] = h
    c_sc[...] = c
    # Written once per chunk (not per timestep). These blocks have a constant
    # index along the time axis, so they stay resident and are written back to
    # HBM only when the batch-block index changes / at grid end.
    hout_ref[...] = h
    cout_ref[...] = c


def _largest_divisor_at_most(n, cap):
    for d in range(min(n, cap), 0, -1):
        if n % d == 0:
            return d
    return 1


@functools.partial(jax.jit, static_argnums=(8, 9))
def _forward_jit(x, h0, c0, wihT, whhT, bias, wlinT, blin, chunk, bb):
    B, T, _ = x.shape
    n_chunks = T // chunk
    nb = B // bb

    # (1) Hoisted input projection: one big parallel matmul; output produced
    #     directly in (T, B, 4*HID) layout (transpose folded into the einsum).
    gx = jnp.einsum("bti,ih->tbh", x, wihT) + bias          # (T, B, 4*HID) f32

    # (5) bf16 MXU operand for the recurrent weight (accumulation stays f32).
    whh_bf16 = whhT.astype(jnp.bfloat16)

    grid = (nb, n_chunks)
    in_specs = [
        pl.BlockSpec((chunk, bb, 4 * HID), lambda i, t: (t, i, 0)),   # gx chunk
        pl.BlockSpec((HID, 4 * HID), lambda i, t: (0, 0)),            # W_hh^T (bf16)
        pl.BlockSpec((bb, HID), lambda i, t: (i, 0)),                 # h0 shard
        pl.BlockSpec((bb, HID), lambda i, t: (i, 0)),                 # c0 shard
    ]
    out_specs = [
        pl.BlockSpec((bb, HID), lambda i, t: (i, 0)),                 # final H
        pl.BlockSpec((bb, HID), lambda i, t: (i, 0)),                 # final C
    ]
    out_shape = [
        jax.ShapeDtypeStruct((B, HID), jnp.float32),
        jax.ShapeDtypeStruct((B, HID), jnp.float32),
    ]

    h_fin, c_fin = pl.pallas_call(
        functools.partial(lstm_kernel, chunk=chunk),
        grid=grid,
        in_specs=in_specs,
        out_specs=out_specs,
        out_shape=out_shape,
        scratch_shapes=[pltpu.VMEM((bb, HID), jnp.float32),
                        pltpu.VMEM((bb, HID), jnp.float32)],
        compiler_params=pltpu.CompilerParams(
            # batch blocks are independent (megacore-shardable); time is sequential
            dimension_semantics=("parallel", "arbitrary")),
    )(gx, whh_bf16, h0[0], c0[0])

    # (4) Final Linear(128 -> 2) on the last hidden state, done in XLA
    #     (torch.sigmoid output in the reference forward is unused).
    logits = h_fin @ wlinT + blin
    return logits, (h_fin[None], c_fin[None])


def my_lstm_forward(x, h0, c0, wihT, whhT, bias, wlinT, blin,
                    chunk=None, batch_block=None):
    """x: (B, T, IN); h0/c0: (1, B, HID) as in nn.LSTM state.

    Returns (logits (B, OUT), (H (1, B, HID), C (1, B, HID))).
    """
    B, T, _ = x.shape
    if chunk is None:
        chunk = _largest_divisor_at_most(T, 128)     # amortize grid-step overhead
    if batch_block is None:
        batch_block = B                              # single batch shard by default
    return _forward_jit(x, h0, c0, wihT, whhT, bias, wlinT, blin,
                        chunk, batch_block)


def lstm_ref(x, h0, c0, wihT, whhT, bias, wlinT, blin):
    """Pure-JAX f32 reference (lax.scan) mirroring nn.LSTM + Linear."""
    def step(carry, x_t):
        h, c = carry
        g = x_t @ wihT + h @ whhT + bias
        i = jax.nn.sigmoid(g[:, :HID])
        f = jax.nn.sigmoid(g[:, HID:2 * HID])
        gg = jnp.tanh(g[:, 2 * HID:3 * HID])
        o = jax.nn.sigmoid(g[:, 3 * HID:])
        c = f * c + i * gg
        h = o * jnp.tanh(c)
        return (h, c), None

    (h, c), _ = jax.lax.scan(step, (h0[0], c0[0]), jnp.transpose(x, (1, 0, 2)))
    logits = h @ wlinT + blin
    return logits, h, c


if __name__ == "__main__":
    key = jax.random.PRNGKey(0)
    B, T = 2, 8

    k_x, k_h, k_c, k_wih, k_whh, k_bih, k_bhh, k_wl, k_bl = jax.random.split(key, 9)

    # Deterministic parameter init, PyTorch-style uniform(-1/sqrt(hidden), 1/sqrt(hidden)).
    bound = 1.0 / jnp.sqrt(jnp.float32(HID))
    w_ih = jax.random.uniform(k_wih, (4 * HID, IN), jnp.float32, -bound, bound)
    w_hh = jax.random.uniform(k_whh, (4 * HID, HID), jnp.float32, -bound, bound)
    b_ih = jax.random.uniform(k_bih, (4 * HID,), jnp.float32, -bound, bound)
    b_hh = jax.random.uniform(k_bhh, (4 * HID,), jnp.float32, -bound, bound)
    w_lin = jax.random.uniform(k_wl, (OUT, HID), jnp.float32, -bound, bound)
    b_lin = jax.random.uniform(k_bl, (OUT,), jnp.float32, -bound, bound)

    wihT = w_ih.T                              # (IN, 4*HID)
    whhT = w_hh.T                              # (HID, 4*HID)
    bias = (b_ih + b_hh)[None, :]              # (1, 4*HID)
    wlinT = w_lin.T                            # (HID, OUT)
    blin = b_lin[None, :]                      # (1, OUT)

    x = jax.random.normal(k_x, (B, T, IN), jnp.float32)
    h0 = jax.random.normal(k_h, (1, B, HID), jnp.float32)
    c0 = jax.random.normal(k_c, (1, B, HID), jnp.float32)

    logits, (H, C) = my_lstm_forward(x, h0, c0, wihT, whhT, bias, wlinT, blin)
    jax.block_until_ready((logits, H, C))

    ref_logits, ref_h, ref_c = lstm_ref(x, h0, c0, wihT, whhT, bias, wlinT, blin)
    assert logits.shape == (B, OUT) and H.shape == (1, B, HID) and C.shape == (1, B, HID)
    # Tolerance accounts for bf16 MXU operands in the recurrent matmul
    # (carry / accumulation / elementwise math stay f32).
    assert jnp.allclose(logits, ref_logits, atol=1e-2, rtol=1e-2)
    assert jnp.allclose(H[0], ref_h, atol=1e-2, rtol=1e-2)
    assert jnp.allclose(C[0], ref_c, atol=1e-2, rtol=1e-2)

    print("KERNEL_OK")
</pallas_src>

<mosaic_0001>
module attributes {stable_mosaic.version = 11 : i64} {
  func.func @lstm_kernel(%arg0: i32, %arg1: i32, %arg2: memref<8x2x512xf32, #tpu.memory_space<vmem>>, %arg3: memref<128x512xbf16, #tpu.memory_space<vmem>>, %arg4: memref<2x128xf32, #tpu.memory_space<vmem>>, %arg5: memref<2x128xf32, #tpu.memory_space<vmem>>, %arg6: memref<2x128xf32, #tpu.memory_space<vmem>>, %arg7: memref<2x128xf32, #tpu.memory_space<vmem>>, %arg8: memref<2x128xf32, #tpu.memory_space<vmem>>, %arg9: memref<2x128xf32, #tpu.memory_space<vmem>>) attributes {dimension_semantics = [#tpu.dimension_semantics<parallel>, #tpu.dimension_semantics<arbitrary>], iteration_bounds = array<i64: 1, 1>, scalar_prefetch = 0 : i64, scratch_operands = 2 : i64, tpu.core_type = #tpu.core_type<tc>, window_params = [{transform_indices = @transform_0, window_bounds = array<i64: 8, 2, 512>}, {pipeline_mode = #tpu.pipeline_mode<synchronous>, transform_indices = @transform_1, window_bounds = array<i64: 128, 512>}, {transform_indices = @transform_2, window_bounds = array<i64: 2, 128>}, {transform_indices = @transform_3, window_bounds = array<i64: 2, 128>}, {transform_indices = @transform_4, window_bounds = array<i64: 2, 128>}, {transform_indices = @transform_5, window_bounds = array<i64: 2, 128>}]} {
    %c0_i32 = arith.constant 0 : i32
    %0 = arith.cmpi eq, %arg1, %c0_i32 : i32
    %1 = arith.extui %0 : i1 to i32
    %c0_i32_0 = arith.constant 0 : i32
    %2 = arith.cmpi ne, %1, %c0_i32_0 : i32
    scf.if %2 {
      %c0_62 = arith.constant 0 : index
      %c0_63 = arith.constant 0 : index
      %258 = vector.load %arg4[%c0_62, %c0_63] : memref<2x128xf32, #tpu.memory_space<vmem>>, vector<2x128xf32>
      %c0_64 = arith.constant 0 : index
      %c0_65 = arith.constant 0 : index
      %259 = vector.load %arg8[%c0_64, %c0_65] : memref<2x128xf32, #tpu.memory_space<vmem>>, vector<2x128xf32>
      tpu.vector_store %arg8[%c0_64, %c0_65], %258 {strides = array<i32>} : memref<2x128xf32, #tpu.memory_space<vmem>>, vector<2x128xf32>,
      %c0_66 = arith.constant 0 : index
      %c0_67 = arith.constant 0 : index
      %260 = vector.load %arg5[%c0_66, %c0_67] : memref<2x128xf32, #tpu.memory_space<vmem>>, vector<2x128xf32>
      %c0_68 = arith.constant 0 : index
      %c0_69 = arith.constant 0 : index
      %261 = vector.load %arg9[%c0_68, %c0_69] : memref<2x128xf32, #tpu.memory_space<vmem>>, vector<2x128xf32>
      tpu.vector_store %arg9[%c0_68, %c0_69], %260 {strides = array<i32>} : memref<2x128xf32, #tpu.memory_space<vmem>>, vector<2x128xf32>,
    } else {
    }
    %c0 = arith.constant 0 : index
    %c0_1 = arith.constant 0 : index
    %3 = vector.load %arg3[%c0, %c0_1] : memref<128x512xbf16, #tpu.memory_space<vmem>>, vector<128x512xbf16>
    %c0_2 = arith.constant 0 : index
    %c0_3 = arith.constant 0 : index
    %4 = vector.load %arg8[%c0_2, %c0_3] : memref<2x128xf32, #tpu.memory_space<vmem>>, vector<2x128xf32>
    %c0_4 = arith.constant 0 : index
    %c0_5 = arith.constant 0 : index
    %5 = vector.load %arg9[%c0_4, %c0_5] : memref<2x128xf32, #tpu.memory_space<vmem>>, vector<2x128xf32>
    %c0_i32_6 = arith.constant 0 : i32
    %6 = arith.index_cast %c0_i32_6 : i32 to index
    %c0_7 = arith.constant 0 : index
    %c0_8 = arith.constant 0 : index
    %7 = vector.load %arg2[%6, %c0_7, %c0_8] : memref<8x2x512xf32, #tpu.memory_space<vmem>>, vector<1x2x512xf32>
    %8 = vector.shape_cast %7 : vector<1x2x512xf32> to vector<2x512xf32>
    %9 = arith.truncf %4 : vector<2x128xf32> to vector<2x128xbf16>
    %cst = arith.constant dense<0.000000e+00> : vector<2x512xf32>
    %10 = tpu.matmul %9, %3, %cst {dimension_numbers = #tpu.dot_dimension_numbers<[1], [0], [0], [1], [0, 0, 1, 1], [], []>} : vector<2x128xbf16>, vector<128x512xbf16>, vector<2x512xf32> -> vector<2x512xf32>
    %11 = arith.addf %8, %10 : vector<2x512xf32>
    %12 = vector.extract_strided_slice %11 {offsets = [0, 0], sizes = [2, 128], strides = [1, 1]} : vector<2x512xf32> to vector<2x128xf32>
    %13 = arith.negf %12 : vector<2x128xf32>
    %14 = math.exp %13 : vector<2x128xf32>
    %cst_9 = arith.constant 1.000000e+00 : f32
    %15 = vector.broadcast %cst_9 : f32 to vector<2x128xf32>
    %16 = arith.addf %15, %14 : vector<2x128xf32>
    %17 = arith.divf %15, %16 : vector<2x128xf32>
    %18 = vector.extract_strided_slice %11 {offsets = [0, 128], sizes = [2, 128], strides = [1, 1]} : vector<2x512xf32> to vector<2x128xf32>
    %19 = arith.negf %18 : vector<2x128xf32>
    %20 = math.exp %19 : vector<2x128xf32>
    %cst_10 = arith.constant 1.000000e+00 : f32
    %21 = vector.broadcast %cst_10 : f32 to vector<2x128xf32>
    %22 = arith.addf %21, %20 : vector<2x128xf32>
    %23 = arith.divf %21, %22 : vector<2x128xf32>
    %24 = vector.extract_strided_slice %11 {offsets = [0, 256], sizes = [2, 128], strides = [1, 1]} : vector<2x512xf32> to vector<2x128xf32>
    %25 = math.tanh %24 : vector<2x128xf32>
    %26 = vector.extract_strided_slice %11 {offsets = [0, 384], sizes = [2, 128], strides = [1, 1]} : vector<2x512xf32> to vector<2x128xf32>
    %27 = arith.negf %26 : vector<2x128xf32>
    %28 = math.exp %27 : vector<2x128xf32>
    %cst_11 = arith.constant 1.000000e+00 : f32
    %29 = vector.broadcast %cst_11 : f32 to vector<2x128xf32>
    %30 = arith.addf %29, %28 : vector<2x128xf32>
    %31 = arith.divf %29, %30 : vector<2x128xf32>
    %32 = arith.mulf %23, %5 : vector<2x128xf32>
    %33 = arith.mulf %17, %25 : vector<2x128xf32>
    %34 = arith.addf %32, %33 : vector<2x128xf32>
    %35 = math.tanh %34 : vector<2x128xf32>
    %36 = arith.mulf %31, %35 : vector<2x128xf32>
    %c1_i32 = arith.constant 1 : i32
    %37 = arith.index_cast %c1_i32 : i32 to index
    %c0_12 = arith.constant 0 : index
    %c0_13 = arith.constant 0 : index
    %38 = vector.load %arg2[%37, %c0_12, %c0_13] : memref<8x2x512xf32, #tpu.memory_space<vmem>>, vector<1x2x512xf32>
    %39 = vector.shape_cast %38 : vector<1x2x512xf32> to vector<2x512xf32>
    %40 = arith.truncf %36 : vector<2x128xf32> to vector<2x128xbf16>
    %cst_14 = arith.constant dense<0.000000e+00> : vector<2x512xf32>
    %41 = tpu.matmul %40, %3, %cst_14 {dimension_numbers = #tpu.dot_dimension_numbers<[1], [0], [0], [1], [0, 0, 1, 1], [], []>} : vector<2x128xbf16>, vector<128x512xbf16>, vector<2x512xf32> -> vector<2x512xf32>
    %42 = arith.addf %39, %41 : vector<2x512xf32>
    %43 = vector.extract_strided_slice %42 {offsets = [0, 0], sizes = [2, 128], strides = [1, 1]} : vector<2x512xf32> to vector<2x128xf32>
    %44 = arith.negf %43 : vector<2x128xf32>
    %45 = math.exp %44 : vector<2x128xf32>
    %cst_15 = arith.constant 1.000000e+00 : f32
    %46 = vector.broadcast %cst_15 : f32 to vector<2x128xf32>
    %47 = arith.addf %46, %45 : vector<2x128xf32>
    %48 = arith.divf %46, %47 : vector<2x128xf32>
    %49 = vector.extract_strided_slice %42 {offsets = [0, 128], sizes = [2, 128], strides = [1, 1]} : vector<2x512xf32> to vector<2x128xf32>
    %50 = arith.negf %49 : vector<2x128xf32>
    %51 = math.exp %50 : vector<2x128xf32>
    %cst_16 = arith.constant 1.000000e+00 : f32
    %52 = vector.broadcast %cst_16 : f32 to vector<2x128xf32>
    %53 = arith.addf %52, %51 : vector<2x128xf32>
    %54 = arith.divf %52, %53 : vector<2x128xf32>
    %55 = vector.extract_strided_slice %42 {offsets = [0, 256], sizes = [2, 128], strides = [1, 1]} : vector<2x512xf32> to vector<2x128xf32>
    %56 = math.tanh %55 : vector<2x128xf32>
    %57 = vector.extract_strided_slice %42 {offsets = [0, 384], sizes = [2, 128], strides = [1, 1]} : vector<2x512xf32> to vector<2x128xf32>
    %58 = arith.negf %57 : vector<2x128xf32>
    %59 = math.exp %58 : vector<2x128xf32>
    %cst_17 = arith.constant 1.000000e+00 : f32
    %60 = vector.broadcast %cst_17 : f32 to vector<2x128xf32>
    %61 = arith.addf %60, %59 : vector<2x128xf32>
    %62 = arith.divf %60, %61 : vector<2x128xf32>
    %63 = arith.mulf %54, %34 : vector<2x128xf32>
    %64 = arith.mulf %48, %56 : vector<2x128xf32>
    %65 = arith.addf %63, %64 : vector<2x128xf32>
    %66 = math.tanh %65 : vector<2x128xf32>
    %67 = arith.mulf %62, %66 : vector<2x128xf32>
    %c2_i32 = arith.constant 2 : i32
    %68 = arith.index_cast %c2_i32 : i32 to index
    %c0_18 = arith.constant 0 : index
    %c0_19 = arith.constant 0 : index
    %69 = vector.load %arg2[%68, %c0_18, %c0_19] : memref<8x2x512xf32, #tpu.memory_space<vmem>>, vector<1x2x512xf32>
    %70 = vector.shape_cast %69 : vector<1x2x512xf32> to vector<2x512xf32>
    %71 = arith.truncf %67 : vector<2x128xf32> to vector<2x128xbf16>
    %cst_20 = arith.constant dense<0.000000e+00> : vector<2x512xf32>
    %72 = tpu.matmul %71, %3, %cst_20 {dimension_numbers = #tpu.dot_dimension_numbers<[1], [0], [0], [1], [0, 0, 1, 1], [], []>} : vector<2x128xbf16>, vector<128x512xbf16>, vector<2x512xf32> -> vector<2x512xf32>
    %73 = arith.addf %70, %72 : vector<2x512xf32>
    %74 = vector.extract_strided_slice %73 {offsets = [0, 0], sizes = [2, 128], strides = [1, 1]} : vector<2x512xf32> to vector<2x128xf32>
    %75 = arith.negf %74 : vector<2x128xf32>
    %76 = math.exp %75 : vector<2x128xf32>
    %cst_21 = arith.constant 1.000000e+00 : f32
    %77 = vector.broadcast %cst_21 : f32 to vector<2x128xf32>
    %78 = arith.addf %77, %76 : vector<2x128xf32>
    %79 = arith.divf %77, %78 : vector<2x128xf32>
    %80 = vector.extract_strided_slice %73 {offsets = [0, 128], sizes = [2, 128], strides = [1, 1]} : vector<2x512xf32> to vector<2x128xf32>
    %81 = arith.negf %80 : vector<2x128xf32>
    %82 = math.exp %81 : vector<2x128xf32>
    %cst_22 = arith.constant 1.000000e+00 : f32
    %83 = vector.broadcast %cst_22 : f32 to vector<2x128xf32>
    %84 = arith.addf %83, %82 : vector<2x128xf32>
    %85 = arith.divf %83, %84 : vector<2x128xf32>
    %86 = vector.extract_strided_slice %73 {offsets = [0, 256], sizes = [2, 128], strides = [1, 1]} : vector<2x512xf32> to vector<2x128xf32>
    %87 = math.tanh %86 : vector<2x128xf32>
    %88 = vector.extract_strided_slice %73 {offsets = [0, 384], sizes = [2, 128], strides = [1, 1]} : vector<2x512xf32> to vector<2x128xf32>
    %89 = arith.negf %88 : vector<2x128xf32>
    %90 = math.exp %89 : vector<2x128xf32>
    %cst_23 = arith.constant 1.000000e+00 : f32
    %91 = vector.broadcast %cst_23 : f32 to vector<2x128xf32>
    %92 = arith.addf %91, %90 : vector<2x128xf32>
    %93 = arith.divf %91, %92 : vector<2x128xf32>
    %94 = arith.mulf %85, %65 : vector<2x128xf32>
    %95 = arith.mulf %79, %87 : vector<2x128xf32>
    %96 = arith.addf %94, %95 : vector<2x128xf32>
    %97 = math.tanh %96 : vector<2x128xf32>
    %98 = arith.mulf %93, %97 : vector<2x128xf32>
    %c3_i32 = arith.constant 3 : i32
    %99 = arith.index_cast %c3_i32 : i32 to index
    %c0_24 = arith.constant 0 : index
    %c0_25 = arith.constant 0 : index
    %100 = vector.load %arg2[%99, %c0_24, %c0_25] : memref<8x2x512xf32, #tpu.memory_space<vmem>>, vector<1x2x512xf32>
    %101 = vector.shape_cast %100 : vector<1x2x512xf32> to vector<2x512xf32>
    %102 = arith.truncf %98 : vector<2x128xf32> to vector<2x128xbf16>
    %cst_26 = arith.constant dense<0.000000e+00> : vector<2x512xf32>
    %103 = tpu.matmul %102, %3, %cst_26 {dimension_numbers = #tpu.dot_dimension_numbers<[1], [0], [0], [1], [0, 0, 1, 1], [], []>} : vector<2x128xbf16>, vector<128x512xbf16>, vector<2x512xf32> -> vector<2x512xf32>
    %104 = arith.addf %101, %103 : vector<2x512xf32>
    %105 = vector.extract_strided_slice %104 {offsets = [0, 0], sizes = [2, 128], strides = [1, 1]} : vector<2x512xf32> to vector<2x128xf32>
    %106 = arith.negf %105 : vector<2x128xf32>
    %107 = math.exp %106 : vector<2x128xf32>
    %cst_27 = arith.constant 1.000000e+00 : f32
    %108 = vector.broadcast %cst_27 : f32 to vector<2x128xf32>
    %109 = arith.addf %108, %107 : vector<2x128xf32>
    %110 = arith.divf %108, %109 : vector<2x128xf32>
    %111 = vector.extract_strided_slice %104 {offsets = [0, 128], sizes = [2, 128], strides = [1, 1]} : vector<2x512xf32> to vector<2x128xf32>
    %112 = arith.negf %111 : vector<2x128xf32>
    %113 = math.exp %112 : vector<2x128xf32>
    %cst_28 = arith.constant 1.000000e+00 : f32
    %114 = vector.broadcast %cst_28 : f32 to vector<2x128xf32>
    %115 = arith.addf %114, %113 : vector<2x128xf32>
    %116 = arith.divf %114, %115 : vector<2x128xf32>
    %117 = vector.extract_strided_slice %104 {offsets = [0, 256], sizes = [2, 128], strides = [1, 1]} : vector<2x512xf32> to vector<2x128xf32>
    %118 = math.tanh %117 : vector<2x128xf32>
    %119 = vector.extract_strided_slice %104 {offsets = [0, 384], sizes = [2, 128], strides = [1, 1]} : vector<2x512xf32> to vector<2x128xf32>
    %120 = arith.negf %119 : vector<2x128xf32>
    %121 = math.exp %120 : vector<2x128xf32>
    %cst_29 = arith.constant 1.000000e+00 : f32
    %122 = vector.broadcast %cst_29 : f32 to vector<2x128xf32>
    %123 = arith.addf %122, %121 : vector<2x128xf32>
    %124 = arith.divf %122, %123 : vector<2x128xf32>
    %125 = arith.mulf %116, %96 : vector<2x128xf32>
    %126 = arith.mulf %110, %118 : vector<2x128xf32>
    %127 = arith.addf %125, %126 : vector<2x128xf32>
    %128 = math.tanh %127 : vector<2x128xf32>
    %129 = arith.mulf %124, %128 : vector<2x128xf32>
    %c4_i32 = arith.constant 4 : i32
    %130 = arith.index_cast %c4_i32 : i32 to index
    %c0_30 = arith.constant 0 : index
    %c0_31 = arith.constant 0 : index
    %131 = vector.load %arg2[%130, %c0_30, %c0_31] : memref<8x2x512xf32, #tpu.memory_space<vmem>>, vector<1x2x512xf32>
    %132 = vector.shape_cast %131 : vector<1x2x512xf32> to vector<2x512xf32>
    %133 = arith.truncf %129 : vector<2x128xf32> to vector<2x128xbf16>
    %cst_32 = arith.constant dense<0.000000e+00> : vector<2x512xf32>
    %134 = tpu.matmul %133, %3, %cst_32 {dimension_numbers = #tpu.dot_dimension_numbers<[1], [0], [0], [1], [0, 0, 1, 1], [], []>} : vector<2x128xbf16>, vector<128x512xbf16>, vector<2x512xf32> -> vector<2x512xf32>
    %135 = arith.addf %132, %134 : vector<2x512xf32>
    %136 = vector.extract_strided_slice %135 {offsets = [0, 0], sizes = [2, 128], strides = [1, 1]} : vector<2x512xf32> to vector<2x128xf32>
    %137 = arith.negf %136 : vector<2x128xf32>
    %138 = math.exp %137 : vector<2x128xf32>
    %cst_33 = arith.constant 1.000000e+00 : f32
    %139 = vector.broadcast %cst_33 : f32 to vector<2x128xf32>
    %140 = arith.addf %139, %138 : vector<2x128xf32>
    %141 = arith.divf %139, %140 : vector<2x128xf32>
    %142 = vector.extract_strided_slice %135 {offsets = [0, 128], sizes = [2, 128], strides = [1, 1]} : vector<2x512xf32> to vector<2x128xf32>
    %143 = arith.negf %142 : vector<2x128xf32>
    %144 = math.exp %143 : vector<2x128xf32>
    %cst_34 = arith.constant 1.000000e+00 : f32
    %145 = vector.broadcast %cst_34 : f32 to vector<2x128xf32>
    %146 = arith.addf %145, %144 : vector<2x128xf32>
    %147 = arith.divf %145, %146 : vector<2x128xf32>
    %148 = vector.extract_strided_slice %135 {offsets = [0, 256], sizes = [2, 128], strides = [1, 1]} : vector<2x512xf32> to vector<2x128xf32>
    %149 = math.tanh %148 : vector<2x128xf32>
    %150 = vector.extract_strided_slice %135 {offsets = [0, 384], sizes = [2, 128], strides = [1, 1]} : vector<2x512xf32> to vector<2x128xf32>
    %151 = arith.negf %150 : vector<2x128xf32>
    %152 = math.exp %151 : vector<2x128xf32>
    %cst_35 = arith.constant 1.000000e+00 : f32
    %153 = vector.broadcast %cst_35 : f32 to vector<2x128xf32>
    %154 = arith.addf %153, %152 : vector<2x128xf32>
    %155 = arith.divf %153, %154 : vector<2x128xf32>
    %156 = arith.mulf %147, %127 : vector<2x128xf32>
    %157 = arith.mulf %141, %149 : vector<2x128xf32>
    %158 = arith.addf %156, %157 : vector<2x128xf32>
    %159 = math.tanh %158 : vector<2x128xf32>
    %160 = arith.mulf %155, %159 : vector<2x128xf32>
    %c5_i32 = arith.constant 5 : i32
    %161 = arith.index_cast %c5_i32 : i32 to index
    %c0_36 = arith.constant 0 : index
    %c0_37 = arith.constant 0 : index
    %162 = vector.load %arg2[%161, %c0_36, %c0_37] : memref<8x2x512xf32, #tpu.memory_space<vmem>>, vector<1x2x512xf32>
    %163 = vector.shape_cast %162 : vector<1x2x512xf32> to vector<2x512xf32>
    %164 = arith.truncf %160 : vector<2x128xf32> to vector<2x128xbf16>
    %cst_38 = arith.constant dense<0.000000e+00> : vector<2x512xf32>
    %165 = tpu.matmul %164, %3, %cst_38 {dimension_numbers = #tpu.dot_dimension_numbers<[1], [0], [0], [1], [0, 0, 1, 1], [], []>} : vector<2x128xbf16>, vector<128x512xbf16>, vector<2x512xf32> -> vector<2x512xf32>
    %166 = arith.addf %163, %165 : vector<2x512xf32>
    %167 = vector.extract_strided_slice %166 {offsets = [0, 0], sizes = [2, 128], strides = [1, 1]} : vector<2x512xf32> to vector<2x128xf32>
    %168 = arith.negf %167 : vector<2x128xf32>
    %169 = math.exp %168 : vector<2x128xf32>
    %cst_39 = arith.constant 1.000000e+00 : f32
    %170 = vector.broadcast %cst_39 : f32 to vector<2x128xf32>
    %171 = arith.addf %170, %169 : vector<2x128xf32>
    %172 = arith.divf %170, %171 : vector<2x128xf32>
    %173 = vector.extract_strided_slice %166 {offsets = [0, 128], sizes = [2, 128], strides = [1, 1]} : vector<2x512xf32> to vector<2x128xf32>
    %174 = arith.negf %173 : vector<2x128xf32>
    %175 = math.exp %174 : vector<2x128xf32>
    %cst_40 = arith.constant 1.000000e+00 : f32
    %176 = vector.broadcast %cst_40 : f32 to vector<2x128xf32>
    %177 = arith.addf %176, %175 : vector<2x128xf32>
    %178 = arith.divf %176, %177 : vector<2x128xf32>
    %179 = vector.extract_strided_slice %166 {offsets = [0, 256], sizes = [2, 128], strides = [1, 1]} : vector<2x512xf32> to vector<2x128xf32>
    %180 = math.tanh %179 : vector<2x128xf32>
    %181 = vector.extract_strided_slice %166 {offsets = [0, 384], sizes = [2, 128], strides = [1, 1]} : vector<2x512xf32> to vector<2x128xf32>
    %182 = arith.negf %181 : vector<2x128xf32>
    %183 = math.exp %182 : vector<2x128xf32>
    %cst_41 = arith.constant 1.000000e+00 : f32
    %184 = vector.broadcast %cst_41 : f32 to vector<2x128xf32>
    %185 = arith.addf %184, %183 : vector<2x128xf32>
    %186 = arith.divf %184, %185 : vector<2x128xf32>
    %187 = arith.mulf %178, %158 : vector<2x128xf32>
    %188 = arith.mulf %172, %180 : vector<2x128xf32>
    %189 = arith.addf %187, %188 : vector<2x128xf32>
    %190 = math.tanh %189 : vector<2x128xf32>
    %191 = arith.mulf %186, %190 : vector<2x128xf32>
    %c6_i32 = arith.constant 6 : i32
    %192 = arith.index_cast %c6_i32 : i32 to index
    %c0_42 = arith.constant 0 : index
    %c0_43 = arith.constant 0 : index
    %193 = vector.load %arg2[%192, %c0_42, %c0_43] : memref<8x2x512xf32, #tpu.memory_space<vmem>>, vector<1x2x512xf32>
    %194 = vector.shape_cast %193 : vector<1x2x512xf32> to vector<2x512xf32>
    %195 = arith.truncf %191 : vector<2x128xf32> to vector<2x128xbf16>
    %cst_44 = arith.constant dense<0.000000e+00> : vector<2x512xf32>
    %196 = tpu.matmul %195, %3, %cst_44 {dimension_numbers = #tpu.dot_dimension_numbers<[1], [0], [0], [1], [0, 0, 1, 1], [], []>} : vector<2x128xbf16>, vector<128x512xbf16>, vector<2x512xf32> -> vector<2x512xf32>
    %197 = arith.addf %194, %196 : vector<2x512xf32>
    %198 = vector.extract_strided_slice %197 {offsets = [0, 0], sizes = [2, 128], strides = [1, 1]} : vector<2x512xf32> to vector<2x128xf32>
    %199 = arith.negf %198 : vector<2x128xf32>
    %200 = math.exp %199 : vector<2x128xf32>
    %cst_45 = arith.constant 1.000000e+00 : f32
    %201 = vector.broadcast %cst_45 : f32 to vector<2x128xf32>
    %202 = arith.addf %201, %200 : vector<2x128xf32>
    %203 = arith.divf %201, %202 : vector<2x128xf32>
    %204 = vector.extract_strided_slice %197 {offsets = [0, 128], sizes = [2, 128], strides = [1, 1]} : vector<2x512xf32> to vector<2x128xf32>
    %205 = arith.negf %204 : vector<2x128xf32>
    %206 = math.exp %205 : vector<2x128xf32>
    %cst_46 = arith.constant 1.000000e+00 : f32
    %207 = vector.broadcast %cst_46 : f32 to vector<2x128xf32>
    %208 = arith.addf %207, %206 : vector<2x128xf32>
    %209 = arith.divf %207, %208 : vector<2x128xf32>
    %210 = vector.extract_strided_slice %197 {offsets = [0, 256], sizes = [2, 128], strides = [1, 1]} : vector<2x512xf32> to vector<2x128xf32>
    %211 = math.tanh %210 : vector<2x128xf32>
    %212 = vector.extract_strided_slice %197 {offsets = [0, 384], sizes = [2, 128], strides = [1, 1]} : vector<2x512xf32> to vector<2x128xf32>
    %213 = arith.negf %212 : vector<2x128xf32>
    %214 = math.exp %213 : vector<2x128xf32>
    %cst_47 = arith.constant 1.000000e+00 : f32
    %215 = vector.broadcast %cst_47 : f32 to vector<2x128xf32>
    %216 = arith.addf %215, %214 : vector<2x128xf32>
    %217 = arith.divf %215, %216 : vector<2x128xf32>
    %218 = arith.mulf %209, %189 : vector<2x128xf32>
    %219 = arith.mulf %203, %211 : vector<2x128xf32>
    %220 = arith.addf %218, %219 : vector<2x128xf32>
    %221 = math.tanh %220 : vector<2x128xf32>
    %222 = arith.mulf %217, %221 : vector<2x128xf32>
    %c7_i32 = arith.constant 7 : i32
    %223 = arith.index_cast %c7_i32 : i32 to index
    %c0_48 = arith.constant 0 : index
    %c0_49 = arith.constant 0 : index
    %224 = vector.load %arg2[%223, %c0_48, %c0_49] : memref<8x2x512xf32, #tpu.memory_space<vmem>>, vector<1x2x512xf32>
    %225 = vector.shape_cast %224 : vector<1x2x512xf32> to vector<2x512xf32>
    %226 = arith.truncf %222 : vector<2x128xf32> to vector<2x128xbf16>
    %cst_50 = arith.constant dense<0.000000e+00> : vector<2x512xf32>
    %227 = tpu.matmul %226, %3, %cst_50 {dimension_numbers = #tpu.dot_dimension_numbers<[1], [0], [0], [1], [0, 0, 1, 1], [], []>} : vector<2x128xbf16>, vector<128x512xbf16>, vector<2x512xf32> -> vector<2x512xf32>
    %228 = arith.addf %225, %227 : vector<2x512xf32>
    %229 = vector.extract_strided_slice %228 {offsets = [0, 0], sizes = [2, 128], strides = [1, 1]} : vector<2x512xf32> to vector<2x128xf32>
    %230 = arith.negf %229 : vector<2x128xf32>
    %231 = math.exp %230 : vector<2x128xf32>
    %cst_51 = arith.constant 1.000000e+00 : f32
    %232 = vector.broadcast %cst_51 : f32 to vector<2x128xf32>
    %233 = arith.addf %232, %231 : vector<2x128xf32>
    %234 = arith.divf %232, %233 : vector<2x128xf32>
    %235 = vector.extract_strided_slice %228 {offsets = [0, 128], sizes = [2, 128], strides = [1, 1]} : vector<2x512xf32> to vector<2x128xf32>
    %236 = arith.negf %235 : vector<2x128xf32>
    %237 = math.exp %236 : vector<2x128xf32>
    %cst_52 = arith.constant 1.000000e+00 : f32
    %238 = vector.broadcast %cst_52 : f32 to vector<2x128xf32>
    %239 = arith.addf %238, %237 : vector<2x128xf32>
    %240 = arith.divf %238, %239 : vector<2x128xf32>
    %241 = vector.extract_strided_slice %228 {offsets = [0, 256], sizes = [2, 128], strides = [1, 1]} : vector<2x512xf32> to vector<2x128xf32>
    %242 = math.tanh %241 : vector<2x128xf32>
    %243 = vector.extract_strided_slice %228 {offsets = [0, 384], sizes = [2, 128], strides = [1, 1]} : vector<2x512xf32> to vector<2x128xf32>
    %244 = arith.negf %243 : vector<2x128xf32>
    %245 = math.exp %244 : vector<2x128xf32>
    %cst_53 = arith.constant 1.000000e+00 : f32
    %246 = vector.broadcast %cst_53 : f32 to vector<2x128xf32>
    %247 = arith.addf %246, %245 : vector<2x128xf32>
    %248 = arith.divf %246, %247 : vector<2x128xf32>
    %249 = arith.mulf %240, %220 : vector<2x128xf32>
    %250 = arith.mulf %234, %242 : vector<2x128xf32>
    %251 = arith.addf %249, %250 : vector<2x128xf32>
    %252 = math.tanh %251 : vector<2x128xf32>
    %253 = arith.mulf %248, %252 : vector<2x128xf32>
    %c8_i32 = arith.constant 8 : i32
    %c0_54 = arith.constant 0 : index
    %c0_55 = arith.constant 0 : index
    %254 = vector.load %arg8[%c0_54, %c0_55] : memref<2x128xf32, #tpu.memory_space<vmem>>, vector<2x128xf32>
    tpu.vector_store %arg8[%c0_54, %c0_55], %253 {strides = array<i32>} : memref<2x128xf32, #tpu.memory_space<vmem>>, vector<2x128xf32>,
    %c0_56 = arith.constant 0 : index
    %c0_57 = arith.constant 0 : index
    %255 = vector.load %arg9[%c0_56, %c0_57] : memref<2x128xf32, #tpu.memory_space<vmem>>, vector<2x128xf32>
    tpu.vector_store %arg9[%c0_56, %c0_57], %251 {strides = array<i32>} : memref<2x128xf32, #tpu.memory_space<vmem>>, vector<2x128xf32>,
    %c0_58 = arith.constant 0 : index
    %c0_59 = arith.constant 0 : index
    %256 = vector.load %arg6[%c0_58, %c0_59] : memref<2x128xf32, #tpu.memory_space<vmem>>, vector<2x128xf32>
    tpu.vector_store %arg6[%c0_58, %c0_59], %253 {strides = array<i32>} : memref<2x128xf32, #tpu.memory_space<vmem>>, vector<2x128xf32>,
    %c0_60 = arith.constant 0 : index
    %c0_61 = arith.constant 0 : index
    %257 = vector.load %arg7[%c0_60, %c0_61] : memref<2x128xf32, #tpu.memory_space<vmem>>, vector<2x128xf32>
    tpu.vector_store %arg7[%c0_60, %c0_61], %251 {strides = array<i32>} : memref<2x128xf32, #tpu.memory_space<vmem>>, vector<2x128xf32>,
    return
  }
  func.func @transform_0(%arg0: i32, %arg1: i32) -> (i32, i32, i32) {
    %c0_i32 = arith.constant 0 : i32
    %c0_i32_0 = arith.constant 0 : i32
    return %arg1, %arg0, %c0_i32 : i32, i32, i32
  }
  func.func @transform_1(%arg0: i32, %arg1: i32) -> (i32, i32) {
    %c0_i32 = arith.constant 0 : i32
    %c0_i32_0 = arith.constant 0 : i32
    %c0_i32_1 = arith.constant 0 : i32
    return %c0_i32, %c0_i32_0 : i32, i32
  }
  func.func @transform_2(%arg0: i32, %arg1: i32) -> (i32, i32) {
    %c0_i32 = arith.constant 0 : i32
    %c0_i32_0 = arith.constant 0 : i32
    return %arg0, %c0_i32 : i32, i32
  }
  func.func @transform_3(%arg0: i32, %arg1: i32) -> (i32, i32) {
    %c0_i32 = arith.constant 0 : i32
    %c0_i32_0 = arith.constant 0 : i32
    return %arg0, %c0_i32 : i32, i32
  }
  func.func @transform_4(%arg0: i32, %arg1: i32) -> (i32, i32) {
    %c0_i32 = arith.constant 0 : i32
    %c0_i32_0 = arith.constant 0 : i32
    return %arg0, %c0_i32 : i32, i32
  }
  func.func @transform_5(%arg0: i32, %arg1: i32) -> (i32, i32) {
    %c0_i32 = arith.constant 0 : i32
    %c0_i32_0 = arith.constant 0 : i32
    return %arg0, %c0_i32 : i32, i32
  }
}

</mosaic_0001>

<bundles_post_ra>
// kernel: _forward_jit.1
= control target key start
LH: loop header
LB: loop body
LE: loop exit
PB: predicated region body
PF: predicated region fallthrough
CT: control target
= control target key end

     0   :  { %v1654_v2 = vmov 0   ;;  %s2276_s0 = inlined_call_operand.vmem [shape: f32[8,2,512], index: 0, kind: input, shape index: {}]   ;;  %s2277_s1 = inlined_call_operand.vmem [shape: bf16[128,512], index: 1, kind: input, shape index: {}]   ;;  %s2278_s2 = inlined_call_operand.vmem [shape: f32[2,128], index: 2, kind: input, shape index: {}]   ;;  %s2279_s3 = inlined_call_operand.vmem [shape: f32[2,128], index: 3, kind: input, shape index: {}]   ;;  %s2280_s4 = inlined_call_operand.vmem [shape: f32[2,128], index: 4, kind: output, shape index: {0}]   ;;  %s2281_s5 = inlined_call_operand.hbm [shape: f32[2,128], index: 5, kind: output, shape index: {1}]  }
   0x1   :  { %v1690_v0 = vld [vmem:[%s2277_s1 + $0x4] ss:$16 sps:$4 sm:$0xff]   ;;  %v1695_v1 = vld [vmem:[%s2277_s1 + $0xc] ss:$16 sps:$4 sm:$0xff]   ;;  %257 = vmatprep.mubr.bf16.mxu0 %v1654_v2  ;;  %298 = vmatprep.mubr.bf16.mxu1 %v1654_v2  ;;  %v1703_v3 = vld [vmem:[%s2277_s1] ss:$16 sps:$4 sm:$0xff]  }
   0x2   :  { %225 = vmatprep.subr.bf16.mxu0 %v1690_v0  ;;  %v1708_v4 = vld [vmem:[%s2277_s1 + $0x8] ss:$16 sps:$4 sm:$0xff]   ;;  %266 = vmatprep.subr.bf16.mxu1 %v1695_v1  ;;  %v1714_v5 = vld [vmem:[%s2277_s1 + $0x24] ss:$16 sps:$4 sm:$0xff]   ;;  %v1721_v6 = vld [vmem:[%s2277_s1 + $0x2c] ss:$16 sps:$4 sm:$0xff]  }
   0x3   :  { %226 = vmatpush1.bf16.msra.mxu0 %v1703_v3  ;;  %267 = vmatpush1.bf16.msra.mxu1 %v1708_v4  ;;  %v1726_v7 = vld [vmem:[%s2277_s1 + $0x20] ss:$16 sps:$4 sm:$0xff]   ;;  %v1732_v8 = vld [vmem:[%s2277_s1 + $0x28] ss:$16 sps:$4 sm:$0xff]   ;;  %v1738_v9 = vld [vmem:[%s2277_s1 + $0x44] ss:$16 sps:$4 sm:$0xff]  }
   0x4   :  { %227 = vmatprep.subr.bf16.mxu0 %v1714_v5  ;;  %268 = vmatprep.subr.bf16.mxu1 %v1721_v6  ;;  %v1743_v10 = vld [vmem:[%s2277_s1 + $0x4c] ss:$16 sps:$4 sm:$0xff]   ;;  %v1748_v11 = vld [vmem:[%s2277_s1 + $0x40] ss:$16 sps:$4 sm:$0xff]   ;;  %v1753_v12 = vld [vmem:[%s2277_s1 + $0x48] ss:$16 sps:$4 sm:$0xff]  }
   0x5   :  { %v1760_v13 = vld [vmem:[%s2277_s1 + $0x64] ss:$16 sps:$4 sm:$0xff]   ;;  %v1767_v14 = vld [vmem:[%s2277_s1 + $0x6c] ss:$16 sps:$4 sm:$0xff]   ;;  %v1772_v15 = vld [vmem:[%s2277_s1 + $0x60] ss:$16 sps:$4 sm:$0xff]  }
   0x6   :  { %v1779_v16 = vld [vmem:[%s2277_s1 + $0x68] ss:$16 sps:$4 sm:$0xff]   ;;  %v1784_v17 = vld [vmem:[%s2277_s1 + $0x84] ss:$16 sps:$4 sm:$0xff]   ;;  %v1791_v18 = vld [vmem:[%s2277_s1 + $0x8c] ss:$16 sps:$4 sm:$0xff]  }
   0x7   :  { %228 = vmatpush1.bf16.msra.mxu0 %v1726_v7  ;;  %269 = vmatpush1.bf16.msra.mxu1 %v1732_v8  ;;  %v1796_v19 = vld [vmem:[%s2277_s1 + $0x80] ss:$16 sps:$4 sm:$0xff]   ;;  %v1801_v20 = vld [vmem:[%s2277_s1 + $0x88] ss:$16 sps:$4 sm:$0xff]   ;;  %v1808_v21 = vld [vmem:[%s2277_s1 + $0xa4] ss:$16 sps:$4 sm:$0xff]  }
   0x8   :  { %229 = vmatprep.subr.bf16.mxu0 %v1738_v9  ;;  %270 = vmatprep.subr.bf16.mxu1 %v1743_v10  ;;  %v1815_v22 = vld [vmem:[%s2277_s1 + $0xac] ss:$16 sps:$4 sm:$0xff]   ;;  %v1820_v23 = vld [vmem:[%s2277_s1 + $0xa0] ss:$16 sps:$4 sm:$0xff]   ;;  %v1827_v24 = vld [vmem:[%s2277_s1 + $0xa8] ss:$16 sps:$4 sm:$0xff]  }
   0x9   :  { %v1832_v25 = vld [vmem:[%s2277_s1 + $0xc4] ss:$16 sps:$4 sm:$0xff]   ;;  %v1839_v26 = vld [vmem:[%s2277_s1 + $0xcc] ss:$16 sps:$4 sm:$0xff]   ;;  %v25_v27 = vld [vmem:[%s2278_s2] sm:$0x3] }
   0xb   :  { %230 = vmatpush1.bf16.msra.mxu0 %v1748_v11  ;;  %271 = vmatpush1.bf16.msra.mxu1 %v1753_v12 }
   0xc   :  { %231 = vmatprep.subr.bf16.mxu0 %v1760_v13  ;;  %272 = vmatprep.subr.bf16.mxu1 %v1767_v14 }
   0xf   :  { %232 = vmatpush1.bf16.msra.mxu0 %v1772_v15  ;;  %273 = vmatpush1.bf16.msra.mxu1 %v1779_v16 }
  0x10   :  { %233 = vmatprep.subr.bf16.mxu0 %v1784_v17  ;;  %274 = vmatprep.subr.bf16.mxu1 %v1791_v18 }
  0x13   :  { %234 = vmatpush1.bf16.msra.mxu0 %v1796_v19  ;;  %275 = vmatpush1.bf16.msra.mxu1 %v1801_v20 }
  0x14   :  { %235 = vmatprep.subr.bf16.mxu0 %v1808_v21  ;;  %276 = vmatprep.subr.bf16.mxu1 %v1815_v22 }
  0x15   :  { %11 = vsyncpa [#allocation5], 0  ;;  %26 = vst [vmem:[#allocation2] sm:$0x3] %v25_v27  ;;  %v1849_v28 = vld [vmem:[%s2277_s1 + $0xc0] ss:$16 sps:$4 sm:$0xff]   ;;  %v316_v39 = vlaneseq }
  0x16   :  { %v1854_v29 = vld [vmem:[%s2277_s1 + $0xc8] ss:$16 sps:$4 sm:$0xff]   ;;  %v1861_v30 = vld [vmem:[%s2277_s1 + $0xe4] ss:$16 sps:$4 sm:$0xff]   ;;  %v1866_v31 = vld [vmem:[%s2277_s1 + $0xec] ss:$16 sps:$4 sm:$0xff]  }
  0x17   :  { %236 = vmatpush1.bf16.msra.mxu0 %v1820_v23  ;;  %277 = vmatpush1.bf16.msra.mxu1 %v1827_v24  ;;  %v1873_v32 = vld [vmem:[%s2277_s1 + $0xe0] ss:$16 sps:$4 sm:$0xff]   ;;  %v1878_v33 = vld [vmem:[%s2277_s1 + $0xe8] ss:$16 sps:$4 sm:$0xff]   ;;  %v1655_v37 = vmov 1983009808  }
  0x18   :  { %237 = vmatprep.subr.bf16.mxu0 %v1832_v25  ;;  %278 = vmatprep.subr.bf16.mxu1 %v1839_v26  ;;  %v27_v36 = vld [vmem:[%s2279_s3] sm:$0x3]  ;;  %v314_v38 = vunpack.c.l.s4 %v1655_v37  ;;  %v317_v41 = vshrl.u32 %v316_v39, 7 }
  0x19   :  { %28 = vst [vmem:[#allocation3] sm:$0x3] %v27_v36  ;;  %v63_v55 = vld [vmem:[%s2276_s0] sm:$0xff] }
  0x1a   :  { %v315_v40 = vunpack.c.0.s8 %v314_v38 }
  0x1b   :  { %238 = vmatpush1.bf16.msra.mxu0 %v1849_v28  ;;  %279 = vmatpush1.bf16.msra.mxu1 %v1854_v29 }
  0x1c   :  { %239 = vmatprep.subr.bf16.mxu0 %v1861_v30  ;;  %280 = vmatprep.subr.bf16.mxu1 %v1866_v31  ;;  %v61_v34 = vld [vmem:[#allocation2] sm:$0x3]  ;;  %v1923_v44 = vsub.s32 %v315_v40, %v317_v41 }
  0x1d   :  { %v64_v35 = vpack.c.bf16 %v61_v34, %v61_v34 }
  0x1f   :  { %240 = vmatpush1.bf16.msra.mxu0 %v1873_v32  ;;  %281 = vmatpush1.bf16.msra.mxu1 %v1878_v33 }
  0x20   :  { %364 = vmatprep.subr.bf16.mxu0 %v1690_v0  ;;  %405 = vmatprep.subr.bf16.mxu1 %v1695_v1  ;;  %v62_v39 = vld [vmem:[#allocation3] sm:$0x3] }
  0x22   :  { %258 = vmatmul.mubr.bf16.vlgmr.msra.gmra.mrb[0].mxu0 %v64_v35  ;;  %299 = vmatmul.mubr.bf16.vlgmr.msra.gmra.mrb[0].mxu1 %v64_v35 }
  0x23   :  { %365 = vmatpush1.bf16.msra.mxu0 %v1703_v3  ;;  %406 = vmatpush1.bf16.msra.mxu1 %v1708_v4 }
  0x24   :  { %366 = vmatprep.subr.bf16.mxu0 %v1714_v5  ;;  %407 = vmatprep.subr.bf16.mxu1 %v1721_v6 }
  0x25   :  { %396 = vmatprep.mubr.bf16.mxu0 %v1654_v2  ;;  %437 = vmatprep.mubr.bf16.mxu1 %v1654_v2 }
  0x27   :  { %367 = vmatpush1.bf16.msra.mxu0 %v1726_v7  ;;  %408 = vmatpush1.bf16.msra.mxu1 %v1732_v8 }
  0x28   :  { %368 = vmatprep.subr.bf16.mxu0 %v1738_v9  ;;  %409 = vmatprep.subr.bf16.mxu1 %v1743_v10 }
  0x2b   :  { %369 = vmatpush1.bf16.msra.mxu0 %v1748_v11  ;;  %410 = vmatpush1.bf16.msra.mxu1 %v1753_v12 }
  0x2c   :  { %370 = vmatprep.subr.bf16.mxu0 %v1760_v13  ;;  %411 = vmatprep.subr.bf16.mxu1 %v1767_v14 }
  0x2f   :  { %371 = vmatpush1.bf16.msra.mxu0 %v1772_v15  ;;  %412 = vmatpush1.bf16.msra.mxu1 %v1779_v16 }
  0x30   :  { %372 = vmatprep.subr.bf16.mxu0 %v1784_v17  ;;  %413 = vmatprep.subr.bf16.mxu1 %v1791_v18 }
  0x33   :  { %373 = vmatpush1.bf16.msra.mxu0 %v1796_v19  ;;  %414 = vmatpush1.bf16.msra.mxu1 %v1801_v20 }
  0x34   :  { %374 = vmatprep.subr.bf16.mxu0 %v1808_v21  ;;  %415 = vmatprep.subr.bf16.mxu1 %v1815_v22 }
  0x37   :  { %375 = vmatpush1.bf16.msra.mxu0 %v1820_v23  ;;  %416 = vmatpush1.bf16.msra.mxu1 %v1827_v24 }
  0x38   :  { %376 = vmatprep.subr.bf16.mxu0 %v1832_v25  ;;  %417 = vmatprep.subr.bf16.mxu1 %v1839_v26 }
  0x3b   :  { %377 = vmatpush1.bf16.msra.mxu0 %v1849_v28  ;;  %418 = vmatpush1.bf16.msra.mxu1 %v1854_v29 }
  0x3c   :  { %378 = vmatprep.subr.bf16.mxu0 %v1861_v30  ;;  %419 = vmatprep.subr.bf16.mxu1 %v1866_v31 }
  0x3f   :  { %379 = vmatpush1.bf16.msra.mxu0 %v1873_v32  ;;  %420 = vmatpush1.bf16.msra.mxu1 %v1878_v33 }
  0x40   :  { %503 = vmatprep.subr.bf16.mxu0 %v1690_v0  ;;  %544 = vmatprep.subr.bf16.mxu1 %v1695_v1 }
  0xf5   :  { %v259_v42 = vpop.f32.mrb[0].mxu0  ;;  %v300_v43 = vpop.f32.mrb[0].mxu1 }
  0xf6   :  { %v261_v45 = vpop.f32.mrb[1].mxu0  ;;  %v302_v46 = vpop.f32.mrb[1].mxu1 }
  0xf7   :  { %v311_v47 = vcombine.low %v259_v42, %v261_v45  ;;  %v312_v48 = vcombine.low %v300_v43, %v302_v46  ;;  %v263_v49 = vpop.f32.mrb[2].mxu0  ;;  %v304_v50 = vpop.f32.mrb[2].mxu1 }
  0xf8   :  { %v264_v51 = vpop.f32.mrb[3].mxu0  ;;  %v305_v52 = vpop.f32.mrb[3].mxu1 }
  0xf9   :  { %v319_v53 = vrot.slane %v311_v47, %v1923_v44  ;;  %v326_v54 = vrot.slane %v312_v48, %v1923_v44 }
  0xfb   :  { %v327_v56 = vcombine.low %v319_v53, %v326_v54 }
  0xfd   :  { %v329_v57 = vadd.f32 %v327_v56, %v63_v55 }
  0xff   :  { %v1388_v58 = vmul.f32 -1.442695, %v329_v57  ;;  %v337_v59 = vrot.slane %v329_v57, 2  ;;  %v348_v61 = vrot.slane %v329_v57, 6  ;;  %v345_v27 = vrot.slane %v329_v57, 4 }
 0x101   :  { %1470 = vpow2.f32 %v1388_v58  ;;  %v1389_v60 = vmul.f32 -1.442695, %v337_v59  ;;  %v1390_v62 = vmul.f32 -1.442695, %v348_v61 }
 0x103   :  { %1472 = vpow2.f32 %v1389_v60 }
 0x104   :  { %1474 = vpow2.f32 %v1390_v62 }
 0x10b   :  { %v1471_v63 = vpop.eup %1470 }
 0x10c   :  { %v333_v34 = vadd.f32 1.0, %v1471_v63  ;;  %v1391_v63 = vld [vmem:[%s2276_s0 + $0x8] sm:$0xff] }
 0x10d   :  { %v1473_v35 = vpop.eup %1472 }
 0x10e   :  { %1476 = vrcp.f32 %v333_v34  ;;  %v342_v36 = vadd.f32 1.0, %v1473_v35  ;;  %v1475_v37 = vpop.eup %1474 }
 0x10f   :  { %1478 = vtanh.f32 %v345_v27  ;;  %v353_v42 = vadd.f32 1.0, %v1475_v37 }
 0x110   :  { %1480 = vrcp.f32 %v342_v36 }
 0x111   :  { %1482 = vrcp.f32 %v353_v42 }
 0x118   :  { %v1477_v38 = vpop.eup %1476 }
 0x119   :  { %v1479_v40 = vpop.eup %1478 }
 0x11a   :  { %v1481_v41 = vpop.eup %1480  ;;  %v357_v45 = vmul.f32 %v1479_v40, %v1477_v38 }
 0x11b   :  { %v356_v43 = vmul.f32 %v1481_v41, %v62_v39  ;;  %v1483_v47 = vpop.eup %1482 }
 0x11d   :  { %v1930_v46 = vadd.f32 %v357_v45, %v356_v43 }
 0x11f   :  { %1484 = vtanh.f32 %v1930_v46 }
 0x129   :  { %v1485_v48 = vpop.eup %1484 }
 0x12a   :  { %v360_v49 = vmul.f32 %v1485_v48, %v1483_v47 }
 0x12c   :  { %v363_v50 = vpack.c.bf16 %v360_v49, %v360_v49 }
 0x12e   :  { %397 = vmatmul.mubr.bf16.vlgmr.msra.gmra.mrb[4].mxu0 %v363_v50  ;;  %438 = vmatmul.mubr.bf16.vlgmr.msra.gmra.mrb[4].mxu1 %v363_v50 }
 0x12f   :  { %504 = vmatpush1.bf16.msra.mxu0 %v1703_v3  ;;  %545 = vmatpush1.bf16.msra.mxu1 %v1708_v4 }
 0x130   :  { %505 = vmatprep.subr.bf16.mxu0 %v1714_v5  ;;  %546 = vmatprep.subr.bf16.mxu1 %v1721_v6 }
 0x131   :  { %535 = vmatprep.mubr.bf16.mxu0 %v1654_v2  ;;  %576 = vmatprep.mubr.bf16.mxu1 %v1654_v2 }
 0x133   :  { %506 = vmatpush1.bf16.msra.mxu0 %v1726_v7  ;;  %547 = vmatpush1.bf16.msra.mxu1 %v1732_v8 }
 0x134   :  { %507 = vmatprep.subr.bf16.mxu0 %v1738_v9  ;;  %548 = vmatprep.subr.bf16.mxu1 %v1743_v10 }
 0x137   :  { %508 = vmatpush1.bf16.msra.mxu0 %v1748_v11  ;;  %549 = vmatpush1.bf16.msra.mxu1 %v1753_v12 }
 0x138   :  { %509 = vmatprep.subr.bf16.mxu0 %v1760_v13  ;;  %550 = vmatprep.subr.bf16.mxu1 %v1767_v14 }
 0x13b   :  { %510 = vmatpush1.bf16.msra.mxu0 %v1772_v15  ;;  %551 = vmatpush1.bf16.msra.mxu1 %v1779_v16 }
 0x13c   :  { %511 = vmatprep.subr.bf16.mxu0 %v1784_v17  ;;  %552 = vmatprep.subr.bf16.mxu1 %v1791_v18 }
 0x13f   :  { %512 = vmatpush1.bf16.msra.mxu0 %v1796_v19  ;;  %553 = vmatpush1.bf16.msra.mxu1 %v1801_v20 }
 0x140   :  { %513 = vmatprep.subr.bf16.mxu0 %v1808_v21  ;;  %554 = vmatprep.subr.bf16.mxu1 %v1815_v22 }
 0x143   :  { %514 = vmatpush1.bf16.msra.mxu0 %v1820_v23  ;;  %555 = vmatpush1.bf16.msra.mxu1 %v1827_v24 }
 0x144   :  { %515 = vmatprep.subr.bf16.mxu0 %v1832_v25  ;;  %556 = vmatprep.subr.bf16.mxu1 %v1839_v26 }
 0x147   :  { %516 = vmatpush1.bf16.msra.mxu0 %v1849_v28  ;;  %557 = vmatpush1.bf16.msra.mxu1 %v1854_v29 }
 0x148   :  { %517 = vmatprep.subr.bf16.mxu0 %v1861_v30  ;;  %558 = vmatprep.subr.bf16.mxu1 %v1866_v31 }
 0x14b   :  { %518 = vmatpush1.bf16.msra.mxu0 %v1873_v32  ;;  %559 = vmatpush1.bf16.msra.mxu1 %v1878_v33 }
 0x14c   :  { %642 = vmatprep.subr.bf16.mxu0 %v1690_v0  ;;  %683 = vmatprep.subr.bf16.mxu1 %v1695_v1 }
 0x201   :  { %v398_v51 = vpop.f32.mrb[4].mxu0  ;;  %v439_v52 = vpop.f32.mrb[4].mxu1 }
 0x202   :  { %v400_v53 = vpop.f32.mrb[5].mxu0  ;;  %v441_v54 = vpop.f32.mrb[5].mxu1 }
 0x203   :  { %v450_v55 = vcombine.low %v398_v51, %v400_v53  ;;  %v451_v56 = vcombine.low %v439_v52, %v441_v54  ;;  %v402_v57 = vpop.f32.mrb[6].mxu0  ;;  %v443_v58 = vpop.f32.mrb[6].mxu1 }
 0x204   :  { %v403_v59 = vpop.f32.mrb[7].mxu0  ;;  %v444_v60 = vpop.f32.mrb[7].mxu1 }
 0x205   :  { %v458_v61 = vrot.slane %v450_v55, %v1923_v44  ;;  %v465_v62 = vrot.slane %v451_v56, %v1923_v44 }
 0x207   :  { %v466_v27 = vcombine.low %v458_v61, %v465_v62 }
 0x209   :  { %v468_v34 = vadd.f32 %v1391_v63, %v466_v27 }
 0x20b   :  { %v1392_v35 = vmul.f32 -1.442695, %v468_v34  ;;  %v476_v36 = vrot.slane %v468_v34, 2  ;;  %v487_v38 = vrot.slane %v468_v34, 6  ;;  %v484_v41 = vrot.slane %v468_v34, 4 }
 0x20d   :  { %1486 = vpow2.f32 %v1392_v35  ;;  %v1393_v37 = vmul.f32 -1.442695, %v476_v36  ;;  %v1394_v39 = vmul.f32 -1.442695, %v487_v38 }
 0x20f   :  { %1488 = vpow2.f32 %v1393_v37 }
 0x210   :  { %1490 = vpow2.f32 %v1394_v39  ;;  %v1395_v39 = vld [vmem:[%s2276_s0 + $0x10] sm:$0xff] }
 0x217   :  { %v1487_v40 = vpop.eup %1486 }
 0x218   :  { %v472_v42 = vadd.f32 1.0, %v1487_v40 }
 0x219   :  { %v1489_v43 = vpop.eup %1488 }
 0x21a   :  { %1492 = vrcp.f32 %v472_v42  ;;  %v481_v45 = vadd.f32 1.0, %v1489_v43  ;;  %v1491_v47 = vpop.eup %1490 }
 0x21b   :  { %1494 = vtanh.f32 %v484_v41  ;;  %v492_v51 = vadd.f32 1.0, %v1491_v47 }
 0x21c   :  { %1496 = vrcp.f32 %v481_v45 }
 0x21d   :  { %1498 = vrcp.f32 %v492_v51 }
 0x224   :  { %v1493_v48 = vpop.eup %1492 }
 0x225   :  { %v1495_v49 = vpop.eup %1494 }
 0x226   :  { %v1497_v50 = vpop.eup %1496  ;;  %v496_v53 = vmul.f32 %v1495_v49, %v1493_v48 }
 0x227   :  { %v495_v52 = vmul.f32 %v1497_v50, %v1930_v46  ;;  %v1499_v55 = vpop.eup %1498 }
 0x229   :  { %v1973_v54 = vadd.f32 %v496_v53, %v495_v52 }
 0x22b   :  { %1500 = vtanh.f32 %v1973_v54 }
 0x235   :  { %v1501_v56 = vpop.eup %1500 }
 0x236   :  { %v499_v57 = vmul.f32 %v1501_v56, %v1499_v55 }
 0x238   :  { %v502_v58 = vpack.c.bf16 %v499_v57, %v499_v57 }
 0x23a   :  { %536 = vmatmul.mubr.bf16.vlgmr.msra.gmra.mrb[8].mxu0 %v502_v58  ;;  %577 = vmatmul.mubr.bf16.vlgmr.msra.gmra.mrb[8].mxu1 %v502_v58 }
 0x23b   :  { %643 = vmatpush1.bf16.msra.mxu0 %v1703_v3  ;;  %684 = vmatpush1.bf16.msra.mxu1 %v1708_v4 }
 0x23c   :  { %644 = vmatprep.subr.bf16.mxu0 %v1714_v5  ;;  %685 = vmatprep.subr.bf16.mxu1 %v1721_v6 }
 0x23d   :  { %674 = vmatprep.mubr.bf16.mxu0 %v1654_v2  ;;  %715 = vmatprep.mubr.bf16.mxu1 %v1654_v2 }
 0x23f   :  { %645 = vmatpush1.bf16.msra.mxu0 %v1726_v7  ;;  %686 = vmatpush1.bf16.msra.mxu1 %v1732_v8 }
 0x240   :  { %646 = vmatprep.subr.bf16.mxu0 %v1738_v9  ;;  %687 = vmatprep.subr.bf16.mxu1 %v1743_v10 }
 0x243   :  { %647 = vmatpush1.bf16.msra.mxu0 %v1748_v11  ;;  %688 = vmatpush1.bf16.msra.mxu1 %v1753_v12 }
 0x244   :  { %648 = vmatprep.subr.bf16.mxu0 %v1760_v13  ;;  %689 = vmatprep.subr.bf16.mxu1 %v1767_v14 }
 0x247   :  { %649 = vmatpush1.bf16.msra.mxu0 %v1772_v15  ;;  %690 = vmatpush1.bf16.msra.mxu1 %v1779_v16 }
 0x248   :  { %650 = vmatprep.subr.bf16.mxu0 %v1784_v17  ;;  %691 = vmatprep.subr.bf16.mxu1 %v1791_v18 }
 0x24b   :  { %651 = vmatpush1.bf16.msra.mxu0 %v1796_v19  ;;  %692 = vmatpush1.bf16.msra.mxu1 %v1801_v20 }
 0x24c   :  { %652 = vmatprep.subr.bf16.mxu0 %v1808_v21  ;;  %693 = vmatprep.subr.bf16.mxu1 %v1815_v22 }
 0x24f   :  { %653 = vmatpush1.bf16.msra.mxu0 %v1820_v23  ;;  %694 = vmatpush1.bf16.msra.mxu1 %v1827_v24 }
 0x250   :  { %654 = vmatprep.subr.bf16.mxu0 %v1832_v25  ;;  %695 = vmatprep.subr.bf16.mxu1 %v1839_v26 }
 0x253   :  { %655 = vmatpush1.bf16.msra.mxu0 %v1849_v28  ;;  %696 = vmatpush1.bf16.msra.mxu1 %v1854_v29 }
 0x254   :  { %656 = vmatprep.subr.bf16.mxu0 %v1861_v30  ;;  %697 = vmatprep.subr.bf16.mxu1 %v1866_v31 }
 0x257   :  { %657 = vmatpush1.bf16.msra.mxu0 %v1873_v32  ;;  %698 = vmatpush1.bf16.msra.mxu1 %v1878_v33 }
 0x258   :  { %781 = vmatprep.subr.bf16.mxu0 %v1690_v0  ;;  %822 = vmatprep.subr.bf16.mxu1 %v1695_v1 }
 0x30d   :  { %v537_v46 = vpop.f32.mrb[8].mxu0  ;;  %v578_v59 = vpop.f32.mrb[8].mxu1 }
 0x30e   :  { %v539_v60 = vpop.f32.mrb[9].mxu0  ;;  %v580_v61 = vpop.f32.mrb[9].mxu1 }
 0x30f   :  { %v589_v62 = vcombine.low %v537_v46, %v539_v60  ;;  %v590_v63 = vcombine.low %v578_v59, %v580_v61  ;;  %v541_v27 = vpop.f32.mrb[10].mxu0  ;;  %v582_v34 = vpop.f32.mrb[10].mxu1 }
 0x310   :  { %v542_v35 = vpop.f32.mrb[11].mxu0  ;;  %v583_v36 = vpop.f32.mrb[11].mxu1 }
 0x311   :  { %v597_v37 = vrot.slane %v589_v62, %v1923_v44  ;;  %v604_v38 = vrot.slane %v590_v63, %v1923_v44 }
 0x313   :  { %v605_v40 = vcombine.low %v597_v37, %v604_v38 }
 0x315   :  { %v607_v41 = vadd.f32 %v1395_v39, %v605_v40 }
 0x317   :  { %v1396_v42 = vmul.f32 -1.442695, %v607_v41  ;;  %v615_v43 = vrot.slane %v607_v41, 2  ;;  %v626_v47 = vrot.slane %v607_v41, 6  ;;  %v623_v50 = vrot.slane %v607_v41, 4 }
 0x319   :  { %1502 = vpow2.f32 %v1396_v42  ;;  %v1397_v45 = vmul.f32 -1.442695, %v615_v43  ;;  %v1398_v48 = vmul.f32 -1.442695, %v626_v47 }
 0x31b   :  { %1504 = vpow2.f32 %v1397_v45 }
 0x31c   :  { %1506 = vpow2.f32 %v1398_v48  ;;  %v1399_v48 = vld [vmem:[%s2276_s0 + $0x18] sm:$0xff] }
 0x323   :  { %v1503_v49 = vpop.eup %1502 }
 0x324   :  { %v611_v51 = vadd.f32 1.0, %v1503_v49 }
 0x325   :  { %v1505_v52 = vpop.eup %1504 }
 0x326   :  { %1508 = vrcp.f32 %v611_v51  ;;  %v620_v53 = vadd.f32 1.0, %v1505_v52  ;;  %v1507_v55 = vpop.eup %1506 }
 0x327   :  { %1510 = vtanh.f32 %v623_v50  ;;  %v631_v46 = vadd.f32 1.0, %v1507_v55 }
 0x328   :  { %1512 = vrcp.f32 %v620_v53 }
 0x329   :  { %1514 = vrcp.f32 %v631_v46 }
 0x330   :  { %v1509_v56 = vpop.eup %1508 }
 0x331   :  { %v1511_v57 = vpop.eup %1510 }
 0x332   :  { %v1513_v58 = vpop.eup %1512  ;;  %v635_v60 = vmul.f32 %v1511_v57, %v1509_v56 }
 0x333   :  { %v634_v59 = vmul.f32 %v1513_v58, %v1973_v54  ;;  %v1515_v62 = vpop.eup %1514 }
 0x335   :  { %v2016_v61 = vadd.f32 %v635_v60, %v634_v59 }
 0x337   :  { %1516 = vtanh.f32 %v2016_v61 }
 0x341   :  { %v1517_v63 = vpop.eup %1516 }
 0x342   :  { %v638_v27 = vmul.f32 %v1517_v63, %v1515_v62 }
 0x344   :  { %v641_v34 = vpack.c.bf16 %v638_v27, %v638_v27 }
 0x346   :  { %675 = vmatmul.mubr.bf16.vlgmr.msra.gmra.mrb[12].mxu0 %v641_v34  ;;  %716 = vmatmul.mubr.bf16.vlgmr.msra.gmra.mrb[12].mxu1 %v641_v34 }
 0x347   :  { %782 = vmatpush1.bf16.msra.mxu0 %v1703_v3  ;;  %823 = vmatpush1.bf16.msra.mxu1 %v1708_v4 }
 0x348   :  { %783 = vmatprep.subr.bf16.mxu0 %v1714_v5  ;;  %824 = vmatprep.subr.bf16.mxu1 %v1721_v6 }
 0x349   :  { %813 = vmatprep.mubr.bf16.mxu0 %v1654_v2  ;;  %854 = vmatprep.mubr.bf16.mxu1 %v1654_v2 }
 0x34b   :  { %784 = vmatpush1.bf16.msra.mxu0 %v1726_v7  ;;  %825 = vmatpush1.bf16.msra.mxu1 %v1732_v8 }
 0x34c   :  { %785 = vmatprep.subr.bf16.mxu0 %v1738_v9  ;;  %826 = vmatprep.subr.bf16.mxu1 %v1743_v10 }
 0x34f   :  { %786 = vmatpush1.bf16.msra.mxu0 %v1748_v11  ;;  %827 = vmatpush1.bf16.msra.mxu1 %v1753_v12 }
 0x350   :  { %787 = vmatprep.subr.bf16.mxu0 %v1760_v13  ;;  %828 = vmatprep.subr.bf16.mxu1 %v1767_v14 }
 0x353   :  { %788 = vmatpush1.bf16.msra.mxu0 %v1772_v15  ;;  %829 = vmatpush1.bf16.msra.mxu1 %v1779_v16 }
 0x354   :  { %789 = vmatprep.subr.bf16.mxu0 %v1784_v17  ;;  %830 = vmatprep.subr.bf16.mxu1 %v1791_v18 }
 0x357   :  { %790 = vmatpush1.bf16.msra.mxu0 %v1796_v19  ;;  %831 = vmatpush1.bf16.msra.mxu1 %v1801_v20 }
 0x358   :  { %791 = vmatprep.subr.bf16.mxu0 %v1808_v21  ;;  %832 = vmatprep.subr.bf16.mxu1 %v1815_v22 }
 0x35b   :  { %792 = vmatpush1.bf16.msra.mxu0 %v1820_v23  ;;  %833 = vmatpush1.bf16.msra.mxu1 %v1827_v24 }
 0x35c   :  { %793 = vmatprep.subr.bf16.mxu0 %v1832_v25  ;;  %834 = vmatprep.subr.bf16.mxu1 %v1839_v26 }
 0x35f   :  { %794 = vmatpush1.bf16.msra.mxu0 %v1849_v28  ;;  %835 = vmatpush1.bf16.msra.mxu1 %v1854_v29 }
 0x360   :  { %795 = vmatprep.subr.bf16.mxu0 %v1861_v30  ;;  %836 = vmatprep.subr.bf16.mxu1 %v1866_v31 }
 0x363   :  { %796 = vmatpush1.bf16.msra.mxu0 %v1873_v32  ;;  %837 = vmatpush1.bf16.msra.mxu1 %v1878_v33 }
 0x364   :  { %920 = vmatprep.subr.bf16.mxu0 %v1690_v0  ;;  %961 = vmatprep.subr.bf16.mxu1 %v1695_v1 }
 0x419   :  { %v676_v54 = vpop.f32.mrb[12].mxu0  ;;  %v717_v35 = vpop.f32.mrb[12].mxu1 }
 0x41a   :  { %v678_v36 = vpop.f32.mrb[13].mxu0  ;;  %v719_v37 = vpop.f32.mrb[13].mxu1 }
 0x41b   :  { %v728_v38 = vcombine.low %v676_v54, %v678_v36  ;;  %v729_v39 = vcombine.low %v717_v35, %v719_v37  ;;  %v680_v40 = vpop.f32.mrb[14].mxu0  ;;  %v721_v41 = vpop.f32.mrb[14].mxu1 }
 0x41c   :  { %v681_v42 = vpop.f32.mrb[15].mxu0  ;;  %v722_v43 = vpop.f32.mrb[15].mxu1 }
 0x41d   :  { %v736_v45 = vrot.slane %v728_v38, %v1923_v44  ;;  %v743_v47 = vrot.slane %v729_v39, %v1923_v44 }
 0x41f   :  { %v744_v49 = vcombine.low %v736_v45, %v743_v47 }
 0x421   :  { %v746_v50 = vadd.f32 %v1399_v48, %v744_v49 }
 0x423   :  { %v1400_v51 = vmul.f32 -1.442695, %v746_v50  ;;  %v754_v52 = vrot.slane %v746_v50, 2  ;;  %v765_v55 = vrot.slane %v746_v50, 6  ;;  %v762_v58 = vrot.slane %v746_v50, 4 }
 0x425   :  { %1518 = vpow2.f32 %v1400_v51  ;;  %v1401_v53 = vmul.f32 -1.442695, %v754_v52  ;;  %v1402_v56 = vmul.f32 -1.442695, %v765_v55 }
 0x427   :  { %1520 = vpow2.f32 %v1401_v53 }
 0x428   :  { %1522 = vpow2.f32 %v1402_v56 }
 0x42f   :  { %v1519_v57 = vpop.eup %1518 }
 0x430   :  { %v750_v46 = vadd.f32 1.0, %v1519_v57 }
 0x431   :  { %v1521_v59 = vpop.eup %1520 }
 0x432   :  { %1524 = vrcp.f32 %v750_v46  ;;  %v759_v60 = vadd.f32 1.0, %v1521_v59  ;;  %v1523_v62 = vpop.eup %1522 }
 0x433   :  { %1526 = vtanh.f32 %v762_v58  ;;  %v770_v54 = vadd.f32 1.0, %v1523_v62 }
 0x434   :  { %1528 = vrcp.f32 %v759_v60 }
 0x435   :  { %1530 = vrcp.f32 %v770_v54 }
 0x43c   :  { %v1525_v63 = vpop.eup %1524 }
 0x43d   :  { %v1527_v27 = vpop.eup %1526 }
 0x43e   :  { %v1529_v34 = vpop.eup %1528  ;;  %v774_v36 = vmul.f32 %v1527_v27, %v1525_v63 }
 0x43f   :  { %v773_v35 = vmul.f32 %v1529_v34, %v2016_v61  ;;  %v1531_v38 = vpop.eup %1530 }
 0x441   :  { %v2059_v37 = vadd.f32 %v774_v36, %v773_v35 }
 0x443   :  { %1532 = vtanh.f32 %v2059_v37 }
 0x44d   :  { %v1533_v39 = vpop.eup %1532 }
 0x44e   :  { %v777_v40 = vmul.f32 %v1533_v39, %v1531_v38 }
 0x450   :  { %v780_v41 = vpack.c.bf16 %v777_v40, %v777_v40 }
 0x452   :  { %814 = vmatmul.mubr.bf16.vlgmr.msra.gmra.mrb[16].mxu0 %v780_v41  ;;  %855 = vmatmul.mubr.bf16.vlgmr.msra.gmra.mrb[16].mxu1 %v780_v41 }
 0x453   :  { %921 = vmatpush1.bf16.msra.mxu0 %v1703_v3  ;;  %962 = vmatpush1.bf16.msra.mxu1 %v1708_v4 }
 0x454   :  { %922 = vmatprep.subr.bf16.mxu0 %v1714_v5  ;;  %963 = vmatprep.subr.bf16.mxu1 %v1721_v6 }
 0x455   :  { %952 = vmatprep.mubr.bf16.mxu0 %v1654_v2  ;;  %993 = vmatprep.mubr.bf16.mxu1 %v1654_v2 }
 0x457   :  { %923 = vmatpush1.bf16.msra.mxu0 %v1726_v7  ;;  %964 = vmatpush1.bf16.msra.mxu1 %v1732_v8 }
 0x458   :  { %924 = vmatprep.subr.bf16.mxu0 %v1738_v9  ;;  %965 = vmatprep.subr.bf16.mxu1 %v1743_v10 }
 0x45b   :  { %925 = vmatpush1.bf16.msra.mxu0 %v1748_v11  ;;  %966 = vmatpush1.bf16.msra.mxu1 %v1753_v12 }
 0x45c   :  { %926 = vmatprep.subr.bf16.mxu0 %v1760_v13  ;;  %967 = vmatprep.subr.bf16.mxu1 %v1767_v14 }
 0x45f   :  { %927 = vmatpush1.bf16.msra.mxu0 %v1772_v15  ;;  %968 = vmatpush1.bf16.msra.mxu1 %v1779_v16 }
 0x460   :  { %928 = vmatprep.subr.bf16.mxu0 %v1784_v17  ;;  %969 = vmatprep.subr.bf16.mxu1 %v1791_v18 }
 0x463   :  { %929 = vmatpush1.bf16.msra.mxu0 %v1796_v19  ;;  %970 = vmatpush1.bf16.msra.mxu1 %v1801_v20 }
 0x464   :  { %930 = vmatprep.subr.bf16.mxu0 %v1808_v21  ;;  %971 = vmatprep.subr.bf16.mxu1 %v1815_v22 }
 0x467   :  { %931 = vmatpush1.bf16.msra.mxu0 %v1820_v23  ;;  %972 = vmatpush1.bf16.msra.mxu1 %v1827_v24 }
 0x468   :  { %932 = vmatprep.subr.bf16.mxu0 %v1832_v25  ;;  %973 = vmatprep.subr.bf16.mxu1 %v1839_v26 }
 0x46b   :  { %933 = vmatpush1.bf16.msra.mxu0 %v1849_v28  ;;  %974 = vmatpush1.bf16.msra.mxu1 %v1854_v29 }
 0x46c   :  { %934 = vmatprep.subr.bf16.mxu0 %v1861_v30  ;;  %975 = vmatprep.subr.bf16.mxu1 %v1866_v31 }
 0x46f   :  { %935 = vmatpush1.bf16.msra.mxu0 %v1873_v32  ;;  %976 = vmatpush1.bf16.msra.mxu1 %v1878_v33 }
 0x470   :  { %1059 = vmatprep.subr.bf16.mxu0 %v1690_v0  ;;  %1100 = vmatprep.subr.bf16.mxu1 %v1695_v1  ;;  %v1403_v0 = vld [vmem:[%s2276_s0 + $0x20] sm:$0xff] }
 0x525   :  { %v815_v3 = vpop.f32.mrb[16].mxu0  ;;  %v856_v4 = vpop.f32.mrb[16].mxu1 }
 0x526   :  { %v817_v61 = vpop.f32.mrb[17].mxu0  ;;  %v858_v42 = vpop.f32.mrb[17].mxu1 }
 0x527   :  { %v867_v43 = vcombine.low %v815_v3, %v817_v61  ;;  %v868_v45 = vcombine.low %v856_v4, %v858_v42  ;;  %v819_v47 = vpop.f32.mrb[18].mxu0  ;;  %v860_v48 = vpop.f32.mrb[18].mxu1 }
 0x528   :  { %v820_v49 = vpop.f32.mrb[19].mxu0  ;;  %v861_v50 = vpop.f32.mrb[19].mxu1 }
 0x529   :  { %v875_v51 = vrot.slane %v867_v43, %v1923_v44  ;;  %v882_v52 = vrot.slane %v868_v45, %v1923_v44  ;;  %v2108_v43 = vld [vmem:[%s2277_s1] ss:$16 sps:$4 sm:$0xff]  }
 0x52b   :  { %v883_v53 = vcombine.low %v875_v51, %v882_v52 }
 0x52d   :  { %v885_v1 = vadd.f32 %v1403_v0, %v883_v53 }
 0x52f   :  { %v1404_v55 = vmul.f32 -1.442695, %v885_v1  ;;  %v893_v56 = vrot.slane %v885_v1, 2  ;;  %v904_v58 = vrot.slane %v885_v1, 6  ;;  %v901_v60 = vrot.slane %v885_v1, 4 }
 0x531   :  { %1534 = vpow2.f32 %v1404_v55  ;;  %v1405_v57 = vmul.f32 -1.442695, %v893_v56  ;;  %v1406_v46 = vmul.f32 -1.442695, %v904_v58  ;;  %v1602_v56 = vld [vmem:[%s2277_s1 + $0x24] ss:$16 sps:$4 sm:$0xff]  }
 0x532   :  { %v1604_v58 = vld [vmem:[%s2277_s1 + $0x20] ss:$16 sps:$4 sm:$0xff]  }
 0x533   :  { %1536 = vpow2.f32 %v1405_v57  ;;  %v1603_v57 = vld [vmem:[%s2277_s1 + $0x2c] ss:$16 sps:$4 sm:$0xff]  }
 0x534   :  { %1538 = vpow2.f32 %v1406_v46  ;;  %v1605_v46 = vld [vmem:[%s2277_s1 + $0x28] ss:$16 sps:$4 sm:$0xff]  }
 0x53b   :  { %v1535_v59 = vpop.eup %1534 }
 0x53c   :  { %v889_v62 = vadd.f32 1.0, %v1535_v59  ;;  %v1606_v59 = vld [vmem:[%s2277_s1 + $0x44] ss:$16 sps:$4 sm:$0xff]  }
 0x53d   :  { %v1537_v63 = vpop.eup %1536 }
 0x53e   :  { %1540 = vrcp.f32 %v889_v62  ;;  %v898_v27 = vadd.f32 1.0, %v1537_v63  ;;  %v1539_v34 = vpop.eup %1538  ;;  %v1609_v62 = vld [vmem:[%s2277_s1 + $0x48] ss:$16 sps:$4 sm:$0xff]   ;;  %v1610_v63 = vld [vmem:[%s2277_s1 + $0x64] ss:$16 sps:$4 sm:$0xff]  }
 0x53f   :  { %1542 = vtanh.f32 %v901_v60  ;;  %v909_v38 = vadd.f32 1.0, %v1539_v34  ;;  %v1607_v60 = vld [vmem:[%s2277_s1 + $0x4c] ss:$16 sps:$4 sm:$0xff]   ;;  %v1612_v34 = vld [vmem:[%s2277_s1 + $0x60] ss:$16 sps:$4 sm:$0xff]  }
 0x540   :  { %1544 = vrcp.f32 %v898_v27  ;;  %v1611_v27 = vld [vmem:[%s2277_s1 + $0x6c] ss:$16 sps:$4 sm:$0xff]  }
 0x541   :  { %1546 = vrcp.f32 %v909_v38  ;;  %v1616_v38 = vld [vmem:[%s2277_s1 + $0x80] ss:$16 sps:$4 sm:$0xff]  }
 0x548   :  { %v1541_v54 = vpop.eup %1540 }
 0x549   :  { %v1543_v35 = vpop.eup %1542 }
 0x54a   :  { %v1545_v36 = vpop.eup %1544  ;;  %v913_v40 = vmul.f32 %v1543_v35, %v1541_v54  ;;  %v1613_v54 = vld [vmem:[%s2277_s1 + $0x68] ss:$16 sps:$4 sm:$0xff]   ;;  %v1614_v35 = vld [vmem:[%s2277_s1 + $0x84] ss:$16 sps:$4 sm:$0xff]  }
 0x54b   :  { %v912_v39 = vmul.f32 %v1545_v36, %v2059_v37  ;;  %v1547_v3 = vpop.eup %1546  ;;  %v2114_v37 = vld [vmem:[%s2277_s1 + $0x8] ss:$16 sps:$4 sm:$0xff]   ;;  %v1615_v36 = vld [vmem:[%s2277_s1 + $0x8c] ss:$16 sps:$4 sm:$0xff]  }
 0x54d   :  { %v2102_v41 = vadd.f32 %v913_v40, %v912_v39  ;;  %v1617_v39 = vld [vmem:[%s2277_s1 + $0x88] ss:$16 sps:$4 sm:$0xff]   ;;  %v1618_v40 = vld [vmem:[%s2277_s1 + $0xa4] ss:$16 sps:$4 sm:$0xff]  }
 0x54f   :  { %1548 = vtanh.f32 %v2102_v41 }
 0x559   :  { %v1549_v4 = vpop.eup %1548 }
 0x55a   :  { %v916_v61 = vmul.f32 %v1549_v4, %v1547_v3  ;;  %v1620_v3 = vld [vmem:[%s2277_s1 + $0xa0] ss:$16 sps:$4 sm:$0xff]   ;;  %v1621_v4 = vld [vmem:[%s2277_s1 + $0xa8] ss:$16 sps:$4 sm:$0xff]  }
 0x55c   :  { %v919_v42 = vpack.c.bf16 %v916_v61, %v916_v61  ;;  %v1622_v61 = vld [vmem:[%s2277_s1 + $0xc4] ss:$16 sps:$4 sm:$0xff]  }
 0x55e   :  { %953 = vmatmul.mubr.bf16.vlgmr.msra.gmra.mrb[20].mxu0 %v919_v42  ;;  %994 = vmatmul.mubr.bf16.vlgmr.msra.gmra.mrb[20].mxu1 %v919_v42  ;;  %v1623_v42 = vld [vmem:[%s2277_s1 + $0xcc] ss:$16 sps:$4 sm:$0xff]  }
 0x55f   :  { %1060 = vmatpush1.bf16.msra.mxu0 %v2108_v43  ;;  %1101 = vmatpush1.bf16.msra.mxu1 %v2114_v37 }
 0x560   :  { %1061 = vmatprep.subr.bf16.mxu0 %v1714_v5  ;;  %1102 = vmatprep.subr.bf16.mxu1 %v1721_v6  ;;  %v1600_v5 = vld [vmem:[%s2277_s1 + $0x4] ss:$16 sps:$4 sm:$0xff]   ;;  %v1601_v6 = vld [vmem:[%s2277_s1 + $0xc] ss:$16 sps:$4 sm:$0xff]  }
 0x561   :  { %1091 = vmatprep.mubr.bf16.mxu0 %v1654_v2  ;;  %1132 = vmatprep.mubr.bf16.mxu1 %v1654_v2 }
 0x563   :  { %1062 = vmatpush1.bf16.msra.mxu0 %v1726_v7  ;;  %1103 = vmatpush1.bf16.msra.mxu1 %v1732_v8 }
 0x564   :  { %1063 = vmatprep.subr.bf16.mxu0 %v1738_v9  ;;  %1104 = vmatprep.subr.bf16.mxu1 %v1743_v10 }
 0x567   :  { %1064 = vmatpush1.bf16.msra.mxu0 %v1748_v11  ;;  %1105 = vmatpush1.bf16.msra.mxu1 %v1753_v12 }
 0x568   :  { %1065 = vmatprep.subr.bf16.mxu0 %v1760_v13  ;;  %1106 = vmatprep.subr.bf16.mxu1 %v1767_v14 }
 0x56b   :  { %1066 = vmatpush1.bf16.msra.mxu0 %v1772_v15  ;;  %1107 = vmatpush1.bf16.msra.mxu1 %v1779_v16 }
 0x56c   :  { %1067 = vmatprep.subr.bf16.mxu0 %v1784_v17  ;;  %1108 = vmatprep.subr.bf16.mxu1 %v1791_v18 }
 0x56f   :  { %1068 = vmatpush1.bf16.msra.mxu0 %v1796_v19  ;;  %1109 = vmatpush1.bf16.msra.mxu1 %v1801_v20  ;;  %v1407_v19 = vld [vmem:[%s2276_s0 + $0x28] sm:$0xff] }
 0x570   :  { %1069 = vmatprep.subr.bf16.mxu0 %v1808_v21  ;;  %1110 = vmatprep.subr.bf16.mxu1 %v1815_v22 }
 0x573   :  { %1070 = vmatpush1.bf16.msra.mxu0 %v1820_v23  ;;  %1111 = vmatpush1.bf16.msra.mxu1 %v1827_v24 }
 0x574   :  { %1071 = vmatprep.subr.bf16.mxu0 %v1832_v25  ;;  %1112 = vmatprep.subr.bf16.mxu1 %v1839_v26 }
 0x577   :  { %1072 = vmatpush1.bf16.msra.mxu0 %v1849_v28  ;;  %1113 = vmatpush1.bf16.msra.mxu1 %v1854_v29 }
 0x578   :  { %1073 = vmatprep.subr.bf16.mxu0 %v1861_v30  ;;  %1114 = vmatprep.subr.bf16.mxu1 %v1866_v31 }
 0x57b   :  { %1074 = vmatpush1.bf16.msra.mxu0 %v1873_v32  ;;  %1115 = vmatpush1.bf16.msra.mxu1 %v1878_v33 }
 0x57c   :  { %1198 = vmatprep.subr.bf16.mxu0 %v1600_v5  ;;  %1239 = vmatprep.subr.bf16.mxu1 %v1601_v6  ;;  %v1626_v5 = vld [vmem:[%s2277_s1 + $0xe4] ss:$16 sps:$4 sm:$0xff]   ;;  %v1627_v6 = vld [vmem:[%s2277_s1 + $0xec] ss:$16 sps:$4 sm:$0xff]  }
 0x631   :  { %v954_v7 = vpop.f32.mrb[20].mxu0  ;;  %v995_v8 = vpop.f32.mrb[20].mxu1 }
 0x632   :  { %v956_v9 = vpop.f32.mrb[21].mxu0  ;;  %v997_v10 = vpop.f32.mrb[21].mxu1 }
 0x633   :  { %v1006_v11 = vcombine.low %v954_v7, %v956_v9  ;;  %v1007_v12 = vcombine.low %v995_v8, %v997_v10  ;;  %v958_v13 = vpop.f32.mrb[22].mxu0  ;;  %v999_v14 = vpop.f32.mrb[22].mxu1  ;;  %v1628_v7 = vld [vmem:[%s2277_s1 + $0xe0] ss:$16 sps:$4 sm:$0xff]   ;;  %v1629_v8 = vld [vmem:[%s2277_s1 + $0xe8] ss:$16 sps:$4 sm:$0xff]  }
 0x634   :  { %v959_v15 = vpop.f32.mrb[23].mxu0  ;;  %v1000_v16 = vpop.f32.mrb[23].mxu1 }
 0x635   :  { %v1014_v17 = vrot.slane %v1006_v11, %v1923_v44  ;;  %v1021_v18 = vrot.slane %v1007_v12, %v1923_v44 }
 0x637   :  { %v1022_v20 = vcombine.low %v1014_v17, %v1021_v18 }
 0x639   :  { %v1024_v21 = vadd.f32 %v1407_v19, %v1022_v20 }
 0x63b   :  { %v1408_v22 = vmul.f32 -1.442695, %v1024_v21  ;;  %v1032_v23 = vrot.slane %v1024_v21, 2  ;;  %v1043_v25 = vrot.slane %v1024_v21, 6  ;;  %v1040_v29 = vrot.slane %v1024_v21, 4  ;;  %v1411_v21 = vld [vmem:[%s2276_s0 + $0x30] sm:$0xff] }
 0x63d   :  { %1550 = vpow2.f32 %v1408_v22  ;;  %v1409_v24 = vmul.f32 -1.442695, %v1032_v23  ;;  %v1410_v26 = vmul.f32 -1.442695, %v1043_v25 }
 0x63f   :  { %1552 = vpow2.f32 %v1409_v24 }
 0x640   :  { %1554 = vpow2.f32 %v1410_v26 }
 0x647   :  { %v1551_v28 = vpop.eup %1550 }
 0x648   :  { %v1028_v30 = vadd.f32 1.0, %v1551_v28 }
 0x649   :  { %v1553_v31 = vpop.eup %1552 }
 0x64a   :  { %1556 = vrcp.f32 %v1028_v30  ;;  %v1037_v32 = vadd.f32 1.0, %v1553_v31  ;;  %v1555_v33 = vpop.eup %1554 }
 0x64b   :  { %1558 = vtanh.f32 %v1040_v29  ;;  %v1048_v49 = vadd.f32 1.0, %v1555_v33 }
 0x64c   :  { %1560 = vrcp.f32 %v1037_v32 }
 0x64d   :  { %1562 = vrcp.f32 %v1048_v49 }
 0x654   :  { %v1557_v45 = vpop.eup %1556 }
 0x655   :  { %v1559_v47 = vpop.eup %1558 }
 0x656   :  { %v1561_v48 = vpop.eup %1560  ;;  %v1052_v51 = vmul.f32 %v1559_v47, %v1557_v45 }
 0x657   :  { %v1051_v50 = vmul.f32 %v1561_v48, %v2102_v41  ;;  %v1563_v0 = vpop.eup %1562  ;;  %v1619_v41 = vld [vmem:[%s2277_s1 + $0xac] ss:$16 sps:$4 sm:$0xff]  }
 0x659   :  { %v2159_v52 = vadd.f32 %v1052_v51, %v1051_v50 }
 0x65b   :  { %1564 = vtanh.f32 %v2159_v52 }
 0x665   :  { %v1565_v53 = vpop.eup %1564 }
 0x666   :  { %v1055_v1 = vmul.f32 %v1565_v53, %v1563_v0 }
 0x668   :  { %v1058_v55 = vpack.c.bf16 %v1055_v1, %v1055_v1 }
 0x66a   :  { %1092 = vmatmul.mubr.bf16.vlgmr.msra.gmra.mrb[24].mxu0 %v1058_v55  ;;  %1133 = vmatmul.mubr.bf16.vlgmr.msra.gmra.mrb[24].mxu1 %v1058_v55 }
 0x66b   :  { %1199 = vmatpush1.bf16.msra.mxu0 %v2108_v43  ;;  %1240 = vmatpush1.bf16.msra.mxu1 %v2114_v37  ;;  %v1624_v43 = vld [vmem:[%s2277_s1 + $0xc0] ss:$16 sps:$4 sm:$0xff]   ;;  %v1625_v37 = vld [vmem:[%s2277_s1 + $0xc8] ss:$16 sps:$4 sm:$0xff]  }
 0x66c   :  { %1200 = vmatprep.subr.bf16.mxu0 %v1602_v56  ;;  %1241 = vmatprep.subr.bf16.mxu1 %v1603_v57 }
 0x66d   :  { %1230 = vmatprep.mubr.bf16.mxu0 %v1654_v2  ;;  %1271 = vmatprep.mubr.bf16.mxu1 %v1654_v2  ;;  %v1608_v2 = vld [vmem:[%s2277_s1 + $0x40] ss:$16 sps:$4 sm:$0xff]  }
 0x66f   :  { %1201 = vmatpush1.bf16.msra.mxu0 %v1604_v58  ;;  %1242 = vmatpush1.bf16.msra.mxu1 %v1605_v46 }
 0x670   :  { %1202 = vmatprep.subr.bf16.mxu0 %v1606_v59  ;;  %1243 = vmatprep.subr.bf16.mxu1 %v1607_v60 }
 0x673   :  { %1203 = vmatpush1.bf16.msra.mxu0 %v1608_v2  ;;  %1244 = vmatpush1.bf16.msra.mxu1 %v1609_v62 }
 0x674   :  { %1204 = vmatprep.subr.bf16.mxu0 %v1610_v63  ;;  %1245 = vmatprep.subr.bf16.mxu1 %v1611_v27 }
 0x677   :  { %1205 = vmatpush1.bf16.msra.mxu0 %v1612_v34  ;;  %1246 = vmatpush1.bf16.msra.mxu1 %v1613_v54 }
 0x678   :  { %1206 = vmatprep.subr.bf16.mxu0 %v1614_v35  ;;  %1247 = vmatprep.subr.bf16.mxu1 %v1615_v36 }
 0x67b   :  { %1207 = vmatpush1.bf16.msra.mxu0 %v1616_v38  ;;  %1248 = vmatpush1.bf16.msra.mxu1 %v1617_v39  ;;  %v1415_v38 = vld [vmem:[%s2276_s0 + $0x38] sm:$0xff]  ;;  %s1656_s0 = smov [#allocation4]  }
 0x67c   :  { %1208 = vmatprep.subr.bf16.mxu0 %v1618_v40  ;;  %1249 = vmatprep.subr.bf16.mxu1 %v1619_v41  ;;  %s1346_s8 = sshll.u32 %s1656_s0, 4  ;;  %s1347_s8 = int_to_ptr.vmem [resolvable:$true] %s1346_s8 }
 0x67d   :  { %s1630_s9 = scalar_lea.vmem %s1347_s8, 32  ;;  %p1635_p1 = scmp.lt.s32.totalorder %s1347_s8, %s1347_s8 }
 0x67e   :  { %p1631_p0 = scmp.ne.s32.totalorder %s1347_s8, %s1630_s9  ;;  %p1636_p2 = scmp.lt.s32.totalorder %s1630_s9, %s1630_s9 }
 0x67f   :  { %1209 = vmatpush1.bf16.msra.mxu0 %v1620_v3  ;;  %1250 = vmatpush1.bf16.msra.mxu1 %v1621_v4 }
 0x680   :  { %1210 = vmatprep.subr.bf16.mxu0 %v1622_v61  ;;  %1251 = vmatprep.subr.bf16.mxu1 %v1623_v42  ;;  %p1637_p3 = por %p1636_p2, %p1635_p1 }
 0x682   :  { %p1638_p4 = pnand %p1637_p3, %p1631_p0 }
 0x683   :  { %1211 = vmatpush1.bf16.msra.mxu0 %v1624_v43  ;;  %1252 = vmatpush1.bf16.msra.mxu1 %v1625_v37 }
 0x684   :  { %1212 = vmatprep.subr.bf16.mxu0 %v1626_v5  ;;  %1253 = vmatprep.subr.bf16.mxu1 %v1627_v6 }
 0x687   :  { %1213 = vmatpush1.bf16.msra.mxu0 %v1628_v7  ;;  %1254 = vmatpush1.bf16.msra.mxu1 %v1629_v8 }
 0x73d   :  { %v1093_v9 = vpop.f32.mrb[24].mxu0  ;;  %v1134_v10 = vpop.f32.mrb[24].mxu1 }
 0x73e   :  { %v1095_v11 = vpop.f32.mrb[25].mxu0  ;;  %v1136_v12 = vpop.f32.mrb[25].mxu1 }
 0x73f   :  { %v1145_v13 = vcombine.low %v1093_v9, %v1095_v11  ;;  %v1146_v14 = vcombine.low %v1134_v10, %v1136_v12  ;;  %v1097_v15 = vpop.f32.mrb[26].mxu0  ;;  %v1138_v16 = vpop.f32.mrb[26].mxu1 }
 0x740   :  { %v1098_v17 = vpop.f32.mrb[27].mxu0  ;;  %v1139_v18 = vpop.f32.mrb[27].mxu1 }
 0x741   :  { %v1153_v19 = vrot.slane %v1145_v13, %v1923_v44  ;;  %v1160_v20 = vrot.slane %v1146_v14, %v1923_v44 }
 0x743   :  { %v1161_v22 = vcombine.low %v1153_v19, %v1160_v20 }
 0x745   :  { %v1163_v23 = vadd.f32 %v1411_v21, %v1161_v22 }
 0x747   :  { %v1412_v24 = vmul.f32 -1.442695, %v1163_v23  ;;  %v1171_v25 = vrot.slane %v1163_v23, 2  ;;  %v1182_v28 = vrot.slane %v1163_v23, 6  ;;  %v1179_v31 = vrot.slane %v1163_v23, 4 }
 0x749   :  { %1566 = vpow2.f32 %v1412_v24  ;;  %v1413_v26 = vmul.f32 -1.442695, %v1171_v25  ;;  %v1414_v29 = vmul.f32 -1.442695, %v1182_v28 }
 0x74b   :  { %1568 = vpow2.f32 %v1413_v26 }
 0x74c   :  { %1570 = vpow2.f32 %v1414_v29 }
 0x753   :  { %v1567_v30 = vpop.eup %1566 }
 0x754   :  { %v1167_v32 = vadd.f32 1.0, %v1567_v30 }
 0x755   :  { %v1569_v33 = vpop.eup %1568 }
 0x756   :  { %1572 = vrcp.f32 %v1167_v32  ;;  %v1176_v45 = vadd.f32 1.0, %v1569_v33  ;;  %v1571_v47 = vpop.eup %1570 }
 0x757   :  { %1574 = vtanh.f32 %v1179_v31  ;;  %v1187_v51 = vadd.f32 1.0, %v1571_v47 }
 0x758   :  { %1576 = vrcp.f32 %v1176_v45 }
 0x759   :  { %1578 = vrcp.f32 %v1187_v51 }
 0x760   :  { %v1573_v48 = vpop.eup %1572 }
 0x761   :  { %v1575_v49 = vpop.eup %1574 }
 0x762   :  { %v1577_v50 = vpop.eup %1576  ;;  %v1191_v53 = vmul.f32 %v1575_v49, %v1573_v48 }
 0x763   :  { %v1190_v0 = vmul.f32 %v1577_v50, %v2159_v52  ;;  %v1579_v55 = vpop.eup %1578 }
 0x765   :  { %v1192_v1 = vadd.f32 %v1191_v53, %v1190_v0 }
 0x767   :  { %1580 = vtanh.f32 %v1192_v1 }
 0x771   :  { %v1581_v56 = vpop.eup %1580 }
 0x772   :  { %v1194_v57 = vmul.f32 %v1581_v56, %v1579_v55 }
 0x774   :  { %v1197_v58 = vpack.c.bf16 %v1194_v57, %v1194_v57 }
 0x776   :  { %1231 = vmatmul.mubr.bf16.vlgmr.msra.gmra.mrb[28].mxu0 %v1197_v58  ;;  %1272 = vmatmul.mubr.bf16.vlgmr.msra.gmra.mrb[28].mxu1 %v1197_v58 }
 0x849   :  { %v1232_v46 = vpop.f32.mrb[28].mxu0  ;;  %v1273_v59 = vpop.f32.mrb[28].mxu1 }
 0x84a   :  { %v1234_v60 = vpop.f32.mrb[29].mxu0  ;;  %v1275_v2 = vpop.f32.mrb[29].mxu1 }
 0x84b   :  { %v1284_v62 = vcombine.low %v1232_v46, %v1234_v60  ;;  %v1285_v63 = vcombine.low %v1273_v59, %v1275_v2  ;;  %v1236_v27 = vpop.f32.mrb[30].mxu0  ;;  %v1277_v34 = vpop.f32.mrb[30].mxu1 }
 0x84c   :  { %v1237_v54 = vpop.f32.mrb[31].mxu0  ;;  %v1278_v52 = vpop.f32.mrb[31].mxu1 }
 0x84d   :  { %v1292_v35 = vrot.slane %v1284_v62, %v1923_v44  ;;  %v1299_v36 = vrot.slane %v1285_v63, %v1923_v44 }
 0x84f   :  { %v1300_v39 = vcombine.low %v1292_v35, %v1299_v36 }
 0x851   :  { %v1302_v40 = vadd.f32 %v1415_v38, %v1300_v39 }
 0x853   :  { %v1416_v41 = vmul.f32 -1.442695, %v1302_v40  ;;  %v1310_v3 = vrot.slane %v1302_v40, 2  ;;  %v1321_v61 = vrot.slane %v1302_v40, 6  ;;  %v1318_v37 = vrot.slane %v1302_v40, 4 }
 0x855   :  { %1582 = vpow2.f32 %v1416_v41  ;;  %v1417_v4 = vmul.f32 -1.442695, %v1310_v3  ;;  %v1418_v42 = vmul.f32 -1.442695, %v1321_v61 }
 0x857   :  { %1584 = vpow2.f32 %v1417_v4 }
 0x858   :  { %1586 = vpow2.f32 %v1418_v42 }
 0x85f   :  { %v1583_v43 = vpop.eup %1582 }
 0x860   :  { %v1306_v5 = vadd.f32 1.0, %v1583_v43 }
 0x861   :  { %v1585_v6 = vpop.eup %1584 }
 0x862   :  { %1588 = vrcp.f32 %v1306_v5  ;;  %v1315_v44 = vadd.f32 1.0, %v1585_v6  ;;  %v1587_v7 = vpop.eup %1586 }
 0x863   :  { %1590 = vtanh.f32 %v1318_v37  ;;  %v1326_v11 = vadd.f32 1.0, %v1587_v7 }
 0x864   :  { %1592 = vrcp.f32 %v1315_v44 }
 0x865   :  { %1594 = vrcp.f32 %v1326_v11 }
 0x86c   :  { %v1589_v8 = vpop.eup %1588 }
 0x86d   :  { %v1591_v9 = vpop.eup %1590 }
 0x86e   :  { %v1593_v10 = vpop.eup %1592  ;;  %v1330_v13 = vmul.f32 %v1591_v9, %v1589_v8 }
 0x86f   :  { %v1329_v12 = vmul.f32 %v1593_v10, %v1192_v1 }
 0x871   :  { %v1331_v14 = vadd.f32 %v1330_v13, %v1329_v12 }
 0x873   :  { %1596 = vtanh.f32 %v1331_v14  ;;  %1335 = vst [vmem:[#allocation3] sm:$0x3] %v1331_v14  ;;  %1337 = vst [vmem:[#allocation4] sm:$0x3] %v1331_v14 }
 0x874   :  { %1641 = shalt.err (!%p1638_p4)
}
 0x875   :  { %s1642_s11 = scalar_lea.hbm %s2281_s5, 32 }
 0x876   :  { %p1643_p5 = scmp.ne.s32.totalorder %s2281_s5, %s1642_s11  ;;  %p1646_p6 = scmp.lt.u32.totalorder %s1642_s11, %s2281_s5 }
 0x878   :  { %p1648_p7 = pnand %p1646_p6, %p1643_p5 }
 0x87a   :  { %1651 = shalt.err (!%p1648_p7)
}
 0x87b   :  { %1349 = dma.vmem_to_hbm [thread:$0]  %s1347_s8, 32, %s2281_s5, [#allocation5]   ;;  %v1595_v15 = vpop.eup %1594 }
 0x87d   :  { %v1597_v16 = vpop.eup %1596 }
 0x87e   :  { %v1333_v17 = vmul.f32 %v1597_v16, %v1595_v15 }
 0x880   :  { %1334 = vst [vmem:[#allocation2] sm:$0x3] %v1333_v17  ;;  %1336 = vst [vmem:[%s2280_s4] sm:$0x3] %v1333_v17 }
 0x881   :  { %1652 = dma.done.wait [#allocation5], 32  }
 0x882   :  { %1653 = vsyncadd [#allocation5], 4294967264 }
 0x883   :  { %1355 = vsyncpa [#allocation5], 1 }

</bundles_post_ra>
